<compile_context>
chip_gen: v6e
topology: v6e:2x2x1
jax: 0.10.0
libtpu: 0.0.40
codegen_flags: <defaults>
</compile_context>

<pallas_src>
import functools

import jax
import jax.numpy as jnp
from jax import lax
from jax.experimental import pallas as pl
from jax.experimental.pallas import tpu as pltpu

RMS_EPS = 1e-6


def _round_up(x, m):
    return (x + m - 1) // m * m


def _pick_tile_i(I, max_tile_i):
    """Largest multiple-of-128 divisor of I that is <= max_tile_i (else I)."""
    if I <= max_tile_i or I % 128 != 0:
        return I
    t = (max_tile_i // 128) * 128
    while t >= 128:
        if I % t == 0:
            return t
        t -= 128
    return I


def _vmem_limit_bytes(tile_m, d, i, o, mm_dtype):
    """Explicit VMEM budget (bytes), clamped to [32 MiB, 64 MiB]."""
    w = jnp.dtype(mm_dtype).itemsize
    # resident weights (assume worst case double-buffered) + RMSNorm weight
    weight_bytes = 2 * ((2 * d * i + i * d + 2 * d * i + i * o) * w + d * 4)
    # double-buffered x / out row tiles
    io_bytes = 2 * (tile_m * d + tile_m * o) * 4
    # live f32 intermediates inside the kernel (accumulators + one I-chunk)
    live_bytes = (3 * tile_m * max(d, o) + 3 * tile_m * min(i, 2048)) * 4
    need = weight_bytes + io_bytes + live_bytes + (4 << 20)
    # cap at 64 MiB so the budget is valid on v7x (64 MiB VMEM per TC) too
    return int(max(32 << 20, min(need, 64 << 20)))


def _enhanced_mlp_kernel(x_ref, g1_ref, u1_ref, d1_ref, rmsw_ref,
                         g2_ref, u2_ref, d2_ref, o_ref,
                         *, tile_i, n_i, mm_dtype):
    """Fused EnhancedQwen2MLP forward for one TILE_M-row block.

    x_ref    : (TM, D)  input rows (float32)
    g1/u1    : (D, I)   layer1 gate/up projections   (I = 2*D), mm_dtype
    d1       : (I, D)   layer1 down projection,                 mm_dtype
    rmsw     : (1, D)   RMSNorm weight (float32)
    g2/u2    : (D, I)   layer2 gate/up projections,             mm_dtype
    d2       : (I, O)   layer2 down projection,                 mm_dtype
    o_ref    : (TM, O)  output rows
    """
    x = x_ref[...]                       # (TM, D) float32
    x_mm = x.astype(mm_dtype)

    tm, d = x.shape
    o_dim = o_ref.shape[-1]

    def swiglu(h_mm, gate_w, up_w, down_w, out_cols):
        """SwiGLU accumulated over I in TILE_I chunks (bounded live values)."""
        def body(ik, acc):
            start = pl.multiple_of(ik * tile_i, tile_i)
            g = jnp.dot(h_mm, gate_w[:, pl.ds(start, tile_i)],
                        preferred_element_type=jnp.float32)
            u = jnp.dot(h_mm, up_w[:, pl.ds(start, tile_i)],
                        preferred_element_type=jnp.float32)
            h = (g * jax.nn.sigmoid(g)) * u      # SiLU(gate) * up, f32
            return acc + jnp.dot(h.astype(mm_dtype),
                                 down_w[pl.ds(start, tile_i), :],
                                 preferred_element_type=jnp.float32)

        acc0 = jnp.zeros((tm, out_cols), jnp.float32)
        return lax.fori_loop(0, n_i, body, acc0, unroll=True)

    # ---- layer1: SwiGLU MLP (D -> I -> D) ----
    y1 = swiglu(x_mm, g1_ref, u1_ref, d1_ref, d)

    # ---- residual add + Qwen2RMSNorm (float32) ----
    z = y1 + x
    var = jnp.mean(z * z, axis=-1, keepdims=True)
    z = z * lax.rsqrt(var + RMS_EPS)
    z = z * rmsw_ref[...]                 # (1, D) broadcast, once per row tile

    # ---- layer2: SwiGLU MLP (D -> I -> O) ----
    out = swiglu(z.astype(mm_dtype), g2_ref, u2_ref, d2_ref, o_dim)

    o_ref[...] = out.astype(o_ref.dtype)


def _enhanced_mlp_pallas(x2d, p, *, block_rows=256, max_tile_i=2048,
                         mm_dtype=jnp.bfloat16):
    """Run the fused kernel on flattened (M, D) rows with one layer's params."""
    M, D = x2d.shape
    I = p["g1"].shape[1]
    O = p["d2"].shape[1]

    tile_i = _pick_tile_i(I, max_tile_i)
    n_i = I // tile_i

    tile_m = min(_round_up(block_rows, 8), _round_up(M, 8))
    m_pad = _round_up(M, tile_m)
    if m_pad != M:
        x2d = jnp.pad(x2d, ((0, m_pad - M), (0, 0)))

    # MXU inputs in bf16 (f32 accumulation); RMSNorm weight stays f32.
    g1 = p["g1"].astype(mm_dtype)
    u1 = p["u1"].astype(mm_dtype)
    d1 = p["d1"].astype(mm_dtype)
    g2 = p["g2"].astype(mm_dtype)
    u2 = p["u2"].astype(mm_dtype)
    d2 = p["d2"].astype(mm_dtype)
    rmsw = p["rmsw"].astype(jnp.float32)

    kernel = functools.partial(_enhanced_mlp_kernel,
                               tile_i=tile_i, n_i=n_i, mm_dtype=mm_dtype)

    const = lambda i: (0, 0)   # weights: same block every step -> VMEM resident

    out = pl.pallas_call(
        kernel,
        out_shape=jax.ShapeDtypeStruct((m_pad, O), x2d.dtype),
        grid=(m_pad // tile_m,),
        in_specs=[
            pl.BlockSpec((tile_m, D), lambda i: (i, 0)),   # x rows (pipelined)
            pl.BlockSpec((D, I), const),                   # gate1
            pl.BlockSpec((D, I), const),                   # up1
            pl.BlockSpec((I, D), const),                   # down1
            pl.BlockSpec((1, D), const),                   # RMSNorm weight
            pl.BlockSpec((D, I), const),                   # gate2
            pl.BlockSpec((D, I), const),                   # up2
            pl.BlockSpec((I, O), const),                   # down2
        ],
        out_specs=pl.BlockSpec((tile_m, O), lambda i: (i, 0)),
        compiler_params=pltpu.CompilerParams(
            dimension_semantics=("parallel",),   # row tiles shard across TCs (v7x)
            vmem_limit_bytes=_vmem_limit_bytes(tile_m, D, I, O, mm_dtype),
        ),
    )(x2d, g1, u1, d1, rmsw, g2, u2, d2)

    return out[:M] if m_pad != M else out


def enhanced_qwen2_mlp(hidden_state, params, *, block_rows=256,
                       max_tile_i=2048, mm_dtype=jnp.bfloat16):
    """Forward of one EnhancedQwen2MLP.

    hidden_state: (batch, seq, input_size)
    params      : dict with keys g1/u1/d1/rmsw/g2/u2/d2 (weights pre-transposed)
    """
    B, S, D = hidden_state.shape
    O = params["d2"].shape[1]
    x2d = hidden_state.reshape(B * S, D).astype(jnp.float32)
    out2d = _enhanced_mlp_pallas(x2d, params, block_rows=block_rows,
                                 max_tile_i=max_tile_i, mm_dtype=mm_dtype)
    return out2d.reshape(B, S, O)


def projection_enhanced_qwen2_mlp(hidden_state, params_list, idx, **kw):
    """ModuleList-style wrapper: applies module `idx` (static python int)."""
    return enhanced_qwen2_mlp(hidden_state, params_list[idx], **kw)


def init_params(key, input_size, output_size, layers):
    """Deterministic parameter init mirroring the module's shapes.

    Linear weights stored transposed: (in_features, out_features).
    intermediate_size = 2 * input_size (intermediate_ratio = 2).
    """
    I = 2 * input_size
    params_list = []
    for _ in range(layers):
        keys = jax.random.split(key, 7)
        key = keys[0]
        scale1 = 1.0 / jnp.sqrt(jnp.float32(input_size))
        scale2 = 1.0 / jnp.sqrt(jnp.float32(I))
        p = {
            # layer1: Qwen2MLP(input_size -> input_size)
            "g1": jax.random.uniform(keys[1], (input_size, I), jnp.float32, -scale1, scale1),
            "u1": jax.random.uniform(keys[2], (input_size, I), jnp.float32, -scale1, scale1),
            "d1": jax.random.uniform(keys[3], (I, input_size), jnp.float32, -scale2, scale2),
            # Qwen2RMSNorm(input_size): weight initialized to ones
            "rmsw": jnp.ones((1, input_size), jnp.float32),
            # layer2: Qwen2MLP(input_size -> output_size)
            "g2": jax.random.uniform(keys[4], (input_size, I), jnp.float32, -scale1, scale1),
            "u2": jax.random.uniform(keys[5], (input_size, I), jnp.float32, -scale1, scale1),
            "d2": jax.random.uniform(keys[6], (I, output_size), jnp.float32, -scale2, scale2),
        }
        params_list.append(p)
    return params_list


def _reference_forward(hidden_state, p):
    """Pure-JAX float32 reference for correctness checking."""
    x = hidden_state.astype(jnp.float32)

    def swiglu(h, g, u, d):
        gate = h @ g
        up = h @ u
        return (gate * jax.nn.sigmoid(gate) * up) @ d

    residual = x
    y = swiglu(x, p["g1"], p["u1"], p["d1"])
    z = y + residual
    var = jnp.mean(z * z, axis=-1, keepdims=True)
    z = z * lax.rsqrt(var + RMS_EPS) * p["rmsw"][0]
    return swiglu(z, p["g2"], p["u2"], p["d2"])


if __name__ == "__main__":
    # Small but lane-dense shapes: D and O multiples of 128 keep the MXU and
    # the output store path unmasked; M = 128 rows.
    batch, seq = 2, 64
    input_size, output_size, layers = 128, 128, 2

    key = jax.random.PRNGKey(0)
    k_x, k_p = jax.random.split(key)
    hidden = jax.random.normal(k_x, (batch, seq, input_size), jnp.float32)
    params_list = init_params(k_p, input_size, output_size, layers)

    idx = 1  # select the second EnhancedQwen2MLP in the ModuleList (static)

    # block_rows=64 -> 2-step parallel row grid; max_tile_i=128 -> 2 I-chunks,
    # so both the pipeline and the in-kernel chunk loop are exercised.
    fwd = jax.jit(functools.partial(projection_enhanced_qwen2_mlp,
                                    idx=idx, block_rows=64, max_tile_i=128))
    out = jax.block_until_ready(fwd(hidden, params_list))

    ref = _reference_forward(hidden, params_list[idx])
    assert out.shape == (batch, seq, output_size), out.shape
    # bf16 MXU inputs with f32 accumulation: loosened tolerance vs f32 reference.
    assert jnp.allclose(out, ref, atol=2e-2, rtol=2e-2), \
        float(jnp.max(jnp.abs(out - ref)))

    # Exact-path sanity check: full-f32 matmuls must match tightly.
    out_f32 = jax.block_until_ready(
        enhanced_qwen2_mlp(hidden, params_list[idx], block_rows=64,
                           max_tile_i=128, mm_dtype=jnp.float32))
    assert jnp.allclose(out_f32, ref, atol=1e-4, rtol=1e-4), \
        float(jnp.max(jnp.abs(out_f32 - ref)))

    print("KERNEL_OK")
</pallas_src>

<mosaic_0001>
module attributes {stable_mosaic.version = 11 : i64} {
  func.func @_enhanced_mlp_kernel(%arg0: i32, %arg1: memref<64x128xf32, #tpu.memory_space<vmem>>, %arg2: memref<128x256xbf16, #tpu.memory_space<vmem>>, %arg3: memref<128x256xbf16, #tpu.memory_space<vmem>>, %arg4: memref<256x128xbf16, #tpu.memory_space<vmem>>, %arg5: memref<1x128xf32, #tpu.memory_space<vmem>>, %arg6: memref<128x256xbf16, #tpu.memory_space<vmem>>, %arg7: memref<128x256xbf16, #tpu.memory_space<vmem>>, %arg8: memref<256x128xbf16, #tpu.memory_space<vmem>>, %arg9: memref<64x128xf32, #tpu.memory_space<vmem>>) attributes {dimension_semantics = [#tpu.dimension_semantics<parallel>], iteration_bounds = array<i64: 2>, scalar_prefetch = 0 : i64, scratch_operands = 0 : i64, tpu.core_type = #tpu.core_type<tc>, window_params = [{transform_indices = @transform_0, window_bounds = array<i64: 64, 128>}, {pipeline_mode = #tpu.pipeline_mode<synchronous>, transform_indices = @transform_1, window_bounds = array<i64: 128, 256>}, {pipeline_mode = #tpu.pipeline_mode<synchronous>, transform_indices = @transform_2, window_bounds = array<i64: 128, 256>}, {pipeline_mode = #tpu.pipeline_mode<synchronous>, transform_indices = @transform_3, window_bounds = array<i64: 256, 128>}, {pipeline_mode = #tpu.pipeline_mode<synchronous>, transform_indices = @transform_4, window_bounds = array<i64: 1, 128>}, {pipeline_mode = #tpu.pipeline_mode<synchronous>, transform_indices = @transform_5, window_bounds = array<i64: 128, 256>}, {pipeline_mode = #tpu.pipeline_mode<synchronous>, transform_indices = @transform_6, window_bounds = array<i64: 128, 256>}, {pipeline_mode = #tpu.pipeline_mode<synchronous>, transform_indices = @transform_7, window_bounds = array<i64: 256, 128>}, {transform_indices = @transform_8, window_bounds = array<i64: 64, 128>}]} {
    %c0 = arith.constant 0 : index
    %c0_0 = arith.constant 0 : index
    %0 = vector.load %arg1[%c0, %c0_0] : memref<64x128xf32, #tpu.memory_space<vmem>>, vector<64x128xf32>
    %1 = arith.truncf %0 : vector<64x128xf32> to vector<64x128xbf16>
    %cst = arith.constant 0.000000e+00 : f32
    %2 = vector.broadcast %cst : f32 to vector<64x128xf32>
    %c0_i32 = arith.constant 0 : i32
    %c128_i32 = arith.constant 128 : i32
    %3 = arith.muli %c0_i32, %c128_i32 : i32
    %4 = tpu.assume_multiple %3, 128 : i32
    %c0_1 = arith.constant 0 : index
    %5 = arith.index_cast %4 : i32 to index
    %6 = vector.load %arg2[%c0_1, %5] : memref<128x256xbf16, #tpu.memory_space<vmem>>, vector<128x128xbf16>
    %cst_2 = arith.constant dense<0.000000e+00> : vector<64x128xf32>
    %7 = tpu.matmul %1, %6, %cst_2 {dimension_numbers = #tpu.dot_dimension_numbers<[1], [0], [0], [1], [0, 0, 1, 1], [], []>} : vector<64x128xbf16>, vector<128x128xbf16>, vector<64x128xf32> -> vector<64x128xf32>
    %c0_3 = arith.constant 0 : index
    %8 = arith.index_cast %4 : i32 to index
    %9 = vector.load %arg3[%c0_3, %8] : memref<128x256xbf16, #tpu.memory_space<vmem>>, vector<128x128xbf16>
    %cst_4 = arith.constant dense<0.000000e+00> : vector<64x128xf32>
    %10 = tpu.matmul %1, %9, %cst_4 {dimension_numbers = #tpu.dot_dimension_numbers<[1], [0], [0], [1], [0, 0, 1, 1], [], []>} : vector<64x128xbf16>, vector<128x128xbf16>, vector<64x128xf32> -> vector<64x128xf32>
    %11 = arith.negf %7 : vector<64x128xf32>
    %12 = math.exp %11 : vector<64x128xf32>
    %cst_5 = arith.constant 1.000000e+00 : f32
    %13 = vector.broadcast %cst_5 : f32 to vector<64x128xf32>
    %14 = arith.addf %13, %12 : vector<64x128xf32>
    %15 = arith.divf %13, %14 : vector<64x128xf32>
    %16 = arith.mulf %7, %15 : vector<64x128xf32>
    %17 = arith.mulf %16, %10 : vector<64x128xf32>
    %18 = arith.truncf %17 : vector<64x128xf32> to vector<64x128xbf16>
    %19 = arith.index_cast %4 : i32 to index
    %c0_6 = arith.constant 0 : index
    %20 = vector.load %arg4[%19, %c0_6] : memref<256x128xbf16, #tpu.memory_space<vmem>>, vector<128x128xbf16>
    %cst_7 = arith.constant dense<0.000000e+00> : vector<64x128xf32>
    %21 = tpu.matmul %18, %20, %cst_7 {dimension_numbers = #tpu.dot_dimension_numbers<[1], [0], [0], [1], [0, 0, 1, 1], [], []>} : vector<64x128xbf16>, vector<128x128xbf16>, vector<64x128xf32> -> vector<64x128xf32>
    %22 = arith.addf %2, %21 : vector<64x128xf32>
    %c1_i32 = arith.constant 1 : i32
    %c128_i32_8 = arith.constant 128 : i32
    %23 = arith.muli %c1_i32, %c128_i32_8 : i32
    %24 = tpu.assume_multiple %23, 128 : i32
    %c0_9 = arith.constant 0 : index
    %25 = arith.index_cast %24 : i32 to index
    %26 = vector.load %arg2[%c0_9, %25] : memref<128x256xbf16, #tpu.memory_space<vmem>>, vector<128x128xbf16>
    %cst_10 = arith.constant dense<0.000000e+00> : vector<64x128xf32>
    %27 = tpu.matmul %1, %26, %cst_10 {dimension_numbers = #tpu.dot_dimension_numbers<[1], [0], [0], [1], [0, 0, 1, 1], [], []>} : vector<64x128xbf16>, vector<128x128xbf16>, vector<64x128xf32> -> vector<64x128xf32>
    %c0_11 = arith.constant 0 : index
    %28 = arith.index_cast %24 : i32 to index
    %29 = vector.load %arg3[%c0_11, %28] : memref<128x256xbf16, #tpu.memory_space<vmem>>, vector<128x128xbf16>
    %cst_12 = arith.constant dense<0.000000e+00> : vector<64x128xf32>
    %30 = tpu.matmul %1, %29, %cst_12 {dimension_numbers = #tpu.dot_dimension_numbers<[1], [0], [0], [1], [0, 0, 1, 1], [], []>} : vector<64x128xbf16>, vector<128x128xbf16>, vector<64x128xf32> -> vector<64x128xf32>
    %31 = arith.negf %27 : vector<64x128xf32>
    %32 = math.exp %31 : vector<64x128xf32>
    %cst_13 = arith.constant 1.000000e+00 : f32
    %33 = vector.broadcast %cst_13 : f32 to vector<64x128xf32>
    %34 = arith.addf %33, %32 : vector<64x128xf32>
    %35 = arith.divf %33, %34 : vector<64x128xf32>
    %36 = arith.mulf %27, %35 : vector<64x128xf32>
    %37 = arith.mulf %36, %30 : vector<64x128xf32>
    %38 = arith.truncf %37 : vector<64x128xf32> to vector<64x128xbf16>
    %39 = arith.index_cast %24 : i32 to index
    %c0_14 = arith.constant 0 : index
    %40 = vector.load %arg4[%39, %c0_14] : memref<256x128xbf16, #tpu.memory_space<vmem>>, vector<128x128xbf16>
    %cst_15 = arith.constant dense<0.000000e+00> : vector<64x128xf32>
    %41 = tpu.matmul %38, %40, %cst_15 {dimension_numbers = #tpu.dot_dimension_numbers<[1], [0], [0], [1], [0, 0, 1, 1], [], []>} : vector<64x128xbf16>, vector<128x128xbf16>, vector<64x128xf32> -> vector<64x128xf32>
    %42 = arith.addf %22, %41 : vector<64x128xf32>
    %c2_i32 = arith.constant 2 : i32
    %43 = arith.addf %42, %0 : vector<64x128xf32>
    %44 = arith.mulf %43, %43 : vector<64x128xf32>
    %cst_16 = arith.constant dense<0.000000e+00> : vector<64xf32>
    %45 = vector.multi_reduction <add>, %44, %cst_16 [1] : vector<64x128xf32> to vector<64xf32>
    %46 = vector.shape_cast %45 : vector<64xf32> to vector<64x1xf32>
    %cst_17 = arith.constant 1.280000e+02 : f32
    %47 = vector.broadcast %cst_17 : f32 to vector<64x1xf32>
    %48 = arith.divf %46, %47 : vector<64x1xf32>
    %cst_18 = arith.constant 9.99999997E-7 : f32
    %49 = vector.broadcast %cst_18 : f32 to vector<64x1xf32>
    %50 = arith.addf %48, %49 : vector<64x1xf32>
    %51 = math.rsqrt %50 : vector<64x1xf32>
    %52 = vector.broadcast %51 : vector<64x1xf32> to vector<64x128xf32>
    %53 = arith.mulf %43, %52 : vector<64x128xf32>
    %c0_19 = arith.constant 0 : index
    %c0_20 = arith.constant 0 : index
    %54 = vector.load %arg5[%c0_19, %c0_20] : memref<1x128xf32, #tpu.memory_space<vmem>>, vector<1x128xf32>
    %55 = vector.broadcast %54 : vector<1x128xf32> to vector<64x128xf32>
    %56 = arith.mulf %53, %55 : vector<64x128xf32>
    %57 = arith.truncf %56 : vector<64x128xf32> to vector<64x128xbf16>
    %cst_21 = arith.constant 0.000000e+00 : f32
    %58 = vector.broadcast %cst_21 : f32 to vector<64x128xf32>
    %c0_i32_22 = arith.constant 0 : i32
    %c128_i32_23 = arith.constant 128 : i32
    %59 = arith.muli %c0_i32_22, %c128_i32_23 : i32
    %60 = tpu.assume_multiple %59, 128 : i32
    %c0_24 = arith.constant 0 : index
    %61 = arith.index_cast %60 : i32 to index
    %62 = vector.load %arg6[%c0_24, %61] : memref<128x256xbf16, #tpu.memory_space<vmem>>, vector<128x128xbf16>
    %cst_25 = arith.constant dense<0.000000e+00> : vector<64x128xf32>
    %63 = tpu.matmul %57, %62, %cst_25 {dimension_numbers = #tpu.dot_dimension_numbers<[1], [0], [0], [1], [0, 0, 1, 1], [], []>} : vector<64x128xbf16>, vector<128x128xbf16>, vector<64x128xf32> -> vector<64x128xf32>
    %c0_26 = arith.constant 0 : index
    %64 = arith.index_cast %60 : i32 to index
    %65 = vector.load %arg7[%c0_26, %64] : memref<128x256xbf16, #tpu.memory_space<vmem>>, vector<128x128xbf16>
    %cst_27 = arith.constant dense<0.000000e+00> : vector<64x128xf32>
    %66 = tpu.matmul %57, %65, %cst_27 {dimension_numbers = #tpu.dot_dimension_numbers<[1], [0], [0], [1], [0, 0, 1, 1], [], []>} : vector<64x128xbf16>, vector<128x128xbf16>, vector<64x128xf32> -> vector<64x128xf32>
    %67 = arith.negf %63 : vector<64x128xf32>
    %68 = math.exp %67 : vector<64x128xf32>
    %cst_28 = arith.constant 1.000000e+00 : f32
    %69 = vector.broadcast %cst_28 : f32 to vector<64x128xf32>
    %70 = arith.addf %69, %68 : vector<64x128xf32>
    %71 = arith.divf %69, %70 : vector<64x128xf32>
    %72 = arith.mulf %63, %71 : vector<64x128xf32>
    %73 = arith.mulf %72, %66 : vector<64x128xf32>
    %74 = arith.truncf %73 : vector<64x128xf32> to vector<64x128xbf16>
    %75 = arith.index_cast %60 : i32 to index
    %c0_29 = arith.constant 0 : index
    %76 = vector.load %arg8[%75, %c0_29] : memref<256x128xbf16, #tpu.memory_space<vmem>>, vector<128x128xbf16>
    %cst_30 = arith.constant dense<0.000000e+00> : vector<64x128xf32>
    %77 = tpu.matmul %74, %76, %cst_30 {dimension_numbers = #tpu.dot_dimension_numbers<[1], [0], [0], [1], [0, 0, 1, 1], [], []>} : vector<64x128xbf16>, vector<128x128xbf16>, vector<64x128xf32> -> vector<64x128xf32>
    %78 = arith.addf %58, %77 : vector<64x128xf32>
    %c1_i32_31 = arith.constant 1 : i32
    %c128_i32_32 = arith.constant 128 : i32
    %79 = arith.muli %c1_i32_31, %c128_i32_32 : i32
    %80 = tpu.assume_multiple %79, 128 : i32
    %c0_33 = arith.constant 0 : index
    %81 = arith.index_cast %80 : i32 to index
    %82 = vector.load %arg6[%c0_33, %81] : memref<128x256xbf16, #tpu.memory_space<vmem>>, vector<128x128xbf16>
    %cst_34 = arith.constant dense<0.000000e+00> : vector<64x128xf32>
    %83 = tpu.matmul %57, %82, %cst_34 {dimension_numbers = #tpu.dot_dimension_numbers<[1], [0], [0], [1], [0, 0, 1, 1], [], []>} : vector<64x128xbf16>, vector<128x128xbf16>, vector<64x128xf32> -> vector<64x128xf32>
    %c0_35 = arith.constant 0 : index
    %84 = arith.index_cast %80 : i32 to index
    %85 = vector.load %arg7[%c0_35, %84] : memref<128x256xbf16, #tpu.memory_space<vmem>>, vector<128x128xbf16>
    %cst_36 = arith.constant dense<0.000000e+00> : vector<64x128xf32>
    %86 = tpu.matmul %57, %85, %cst_36 {dimension_numbers = #tpu.dot_dimension_numbers<[1], [0], [0], [1], [0, 0, 1, 1], [], []>} : vector<64x128xbf16>, vector<128x128xbf16>, vector<64x128xf32> -> vector<64x128xf32>
    %87 = arith.negf %83 : vector<64x128xf32>
    %88 = math.exp %87 : vector<64x128xf32>
    %cst_37 = arith.constant 1.000000e+00 : f32
    %89 = vector.broadcast %cst_37 : f32 to vector<64x128xf32>
    %90 = arith.addf %89, %88 : vector<64x128xf32>
    %91 = arith.divf %89, %90 : vector<64x128xf32>
    %92 = arith.mulf %83, %91 : vector<64x128xf32>
    %93 = arith.mulf %92, %86 : vector<64x128xf32>
    %94 = arith.truncf %93 : vector<64x128xf32> to vector<64x128xbf16>
    %95 = arith.index_cast %80 : i32 to index
    %c0_38 = arith.constant 0 : index
    %96 = vector.load %arg8[%95, %c0_38] : memref<256x128xbf16, #tpu.memory_space<vmem>>, vector<128x128xbf16>
    %cst_39 = arith.constant dense<0.000000e+00> : vector<64x128xf32>
    %97 = tpu.matmul %94, %96, %cst_39 {dimension_numbers = #tpu.dot_dimension_numbers<[1], [0], [0], [1], [0, 0, 1, 1], [], []>} : vector<64x128xbf16>, vector<128x128xbf16>, vector<64x128xf32> -> vector<64x128xf32>
    %98 = arith.addf %78, %97 : vector<64x128xf32>
    %c2_i32_40 = arith.constant 2 : i32
    %c0_41 = arith.constant 0 : index
    %c0_42 = arith.constant 0 : index
    %99 = vector.load %arg9[%c0_41, %c0_42] : memref<64x128xf32, #tpu.memory_space<vmem>>, vector<64x128xf32>
    tpu.vector_store %arg9[%c0_41, %c0_42], %98 {strides = array<i32>} : memref<64x128xf32, #tpu.memory_space<vmem>>, vector<64x128xf32>,
    return
  }
  func.func @transform_0(%arg0: i32) -> (i32, i32) {
    %c0_i32 = arith.constant 0 : i32
    %c0_i32_0 = arith.constant 0 : i32
    return %arg0, %c0_i32 : i32, i32
  }
  func.func @transform_1(%arg0: i32) -> (i32, i32) {
    %c0_i32 = arith.constant 0 : i32
    %c0_i32_0 = arith.constant 0 : i32
    %c0_i32_1 = arith.constant 0 : i32
    return %c0_i32, %c0_i32_0 : i32, i32
  }
  func.func @transform_2(%arg0: i32) -> (i32, i32) {
    %c0_i32 = arith.constant 0 : i32
    %c0_i32_0 = arith.constant 0 : i32
    %c0_i32_1 = arith.constant 0 : i32
    return %c0_i32, %c0_i32_0 : i32, i32
  }
  func.func @transform_3(%arg0: i32) -> (i32, i32) {
    %c0_i32 = arith.constant 0 : i32
    %c0_i32_0 = arith.constant 0 : i32
    %c0_i32_1 = arith.constant 0 : i32
    return %c0_i32, %c0_i32_0 : i32, i32
  }
  func.func @transform_4(%arg0: i32) -> (i32, i32) {
    %c0_i32 = arith.constant 0 : i32
    %c0_i32_0 = arith.constant 0 : i32
    %c0_i32_1 = arith.constant 0 : i32
    return %c0_i32, %c0_i32_0 : i32, i32
  }
  func.func @transform_5(%arg0: i32) -> (i32, i32) {
    %c0_i32 = arith.constant 0 : i32
    %c0_i32_0 = arith.constant 0 : i32
    %c0_i32_1 = arith.constant 0 : i32
    return %c0_i32, %c0_i32_0 : i32, i32
  }
  func.func @transform_6(%arg0: i32) -> (i32, i32) {
    %c0_i32 = arith.constant 0 : i32
    %c0_i32_0 = arith.constant 0 : i32
    %c0_i32_1 = arith.constant 0 : i32
    return %c0_i32, %c0_i32_0 : i32, i32
  }
  func.func @transform_7(%arg0: i32) -> (i32, i32) {
    %c0_i32 = arith.constant 0 : i32
    %c0_i32_0 = arith.constant 0 : i32
    %c0_i32_1 = arith.constant 0 : i32
    return %c0_i32, %c0_i32_0 : i32, i32
  }
  func.func @transform_8(%arg0: i32) -> (i32, i32) {
    %c0_i32 = arith.constant 0 : i32
    %c0_i32_0 = arith.constant 0 : i32
    return %arg0, %c0_i32 : i32, i32
  }
}

</mosaic_0001>

<bundles_post_ra>
// kernel: projection_enhanced_qwen2_mlp.1
= control target key start
LH: loop header
LB: loop body
LE: loop exit
PB: predicated region body
PF: predicated region fallthrough
CT: control target
= control target key end

     0   :  { %13 = vsyncpa [#allocation3], 0  ;;  %s3979_s0 = inlined_call_operand.vmem [shape: f32[128,128], index: 0, kind: input, shape index: {}]   ;;  %s3980_s1 = inlined_call_operand.vmem [shape: bf16[128,256], index: 1, kind: input, shape index: {}]   ;;  %s3981_s2 = inlined_call_operand.vmem [shape: bf16[128,256], index: 2, kind: input, shape index: {}]   ;;  %s3982_s3 = inlined_call_operand.vmem [shape: bf16[256,128], index: 3, kind: input, shape index: {}]   ;;  %s3983_s4 = inlined_call_operand.vmem [shape: f32[1,128], index: 4, kind: input, shape index: {}]   ;;  %s3984_s5 = inlined_call_operand.vmem [shape: bf16[128,256], index: 5, kind: input, shape index: {}]   ;;  %s3985_s6 = inlined_call_operand.vmem [shape: bf16[128,256], index: 6, kind: input, shape index: {}]   ;;  %s3986_s7 = inlined_call_operand.vmem [shape: bf16[256,128], index: 7, kind: input, shape index: {}]   ;;  %s3987_s8 = inlined_call_operand.hbm [shape: f32[128,128], index: 8, kind: output, shape index: {}]  }
   0x1   :  { %15 = vsyncpa [#allocation3 + $0x1], 0  ;;  %s3376_s27 = smov 0   ;;  %s3378_s28 = smov 0  }
   0x2   :  { %s3380_s29 = smov 0   ;;  %s3382_s30 = smov 0  }
   0x3 LB: > { %s3397_s9 = sadd.s32 4294967295, %s3326_s30   ;;  %s2314_s10 = sadd.s32 4294967294, %s3326_s30   ;;  %s3326_s30 = sphi %s3382_s30, %s3993_s30   ;;  %s3322_s29 = sphi %s3380_s29, %s3992_s29   ;;  %s3318_s28 = sphi %s3378_s28, %s3991_s28   ;;  %s3314_s27 = sphi %s3376_s27, %s3990_s27  }
   0x4   : > { %s3401_s11 = sadd.s32 1, %s3326_s30   ;;  %s201_s12 = sadd.s32 1, %s3322_s29 }
   0x5   : > { %s198_s13 = ssub.s32 %s3326_s30, %s3401_s11  ;;  %p211_p0 = scmp.ne.s32.totalorder %s3322_s29, %s3318_s28 }
   0x6   : > { %p199_p1 = scmp.eq.s32.totalorder %s198_s13, 0  ;;  %p212_p2 = scmp.eq.s32.totalorder %s3397_s9, 1 }
   0x7   : > { %p217_p3 = scmp.ne.s32.totalorder %s3318_s28, %s3314_s27  ;;  %p218_p4 = scmp.eq.s32.totalorder %s2314_s10, 1 }
   0x8   : > { %s3412_s14 = scalar_select %p199_p1, %s3322_s29, %s201_s12  }
   0x9   : > { %p3414_p5 = por %p212_p2, %p211_p0  ;;  %p3418_p6 = por %p218_p4, %p217_p3 }
   0xa   : > { %p2317_p7 = scmp.ge.s32.totalorder %s3326_s30, 1  ;;  %p266_p8 = scmp.lt.s32.totalorder %s3326_s30, 3 }
   0xc   : > { %p267_p9 = pnand %p2317_p7, %p266_p8 }
   0xd   : > { %s2319_s10 = sshll.u32 (!%p267_p9), %s3397_s9, 3  ;;  %s2551_s17 = sshll.u32 (!%p267_p9), %s3397_s9, 10 }
   0xe   : > { %270 = sbr.rel (%p267_p9) target bundleno = 1183 (0x49f), region = 52  ;;  %p301_p10 = scmp.lt.s32.totalorder (!%p267_p9), %s2319_s10, 15 }
   0xf   : > { %s3328_s23 = smov (!%p267_p9), [#allocation2]  }
  0x13   : > { %v3025_v0 = vld [vmem:[%s3980_s1 + $0x70] ss:$8 sps:$4 sm:$0xff]   ;;  %v3026_v1 = vld [vmem:[%s3980_s1 + $0x60] ss:$8 sps:$4 sm:$0xff]   ;;  %s3995_s10 = smov (!%p301_p10, %s2319_s10), 15 }
  0x14   : > { %2696 = vmatprep.subr.bf16.mxu0 %v3025_v0  ;;  %v3027_v2 = vld [vmem:[%s3980_s1 + $0x50] ss:$8 sps:$4 sm:$0xff]   ;;  %v3028_v3 = vld [vmem:[%s3980_s1 + $0x40] ss:$8 sps:$4 sm:$0xff]   ;;  %s2320_s21 = sshll.u32 %s3995_s10, 3  ;;  %s297_s10 = sand.u32 1, %s3318_s28  }
  0x15   : > { %2697 = vmatpush3.bf16.msra.mxu0 %v3025_v0  ;;  %v3033_v4 = vld [vmem:[%s3981_s2 + $0x70] ss:$8 sps:$4 sm:$0xff]   ;;  %v3034_v5 = vld [vmem:[%s3981_s2 + $0x60] ss:$8 sps:$4 sm:$0xff]   ;;  %s3452_s24 = scalar_lea.vmem %s3979_s0, %s2320_s21  ;;  %v3035_v19 = vld [vmem:[%s3980_s1 + $0x74] ss:$8 sps:$4 sm:$0xff]   ;;  %s3933_s21 = scalar_lea.hbm %s3987_s8, %s2551_s17 }
  0x16   : > { %2698 = vmatprep.subr.bf16.mxu0 %v3026_v1  ;;  %2720 = vmatprep.subr.bf16.mxu1 %v3033_v4  ;;  %v3029_v6 = vld [vmem:[%s3980_s1 + $0x30] ss:$8 sps:$4 sm:$0xff]   ;;  %v3030_v8 = vld [vmem:[%s3980_s1 + $0x20] ss:$8 sps:$4 sm:$0xff]   ;;  %v3037_v25 = vld [vmem:[%s3980_s1 + $0x64] ss:$8 sps:$4 sm:$0xff]  }
  0x17   : > { %2721 = vmatpush3.bf16.msra.mxu1 %v3033_v4  ;;  %v3036_v7 = vld [vmem:[%s3981_s2 + $0x50] ss:$8 sps:$4 sm:$0xff]   ;;  %v3458_v9 = vld [vmem:[%s3452_s24] sm:$0xff]  ;;  %v309_v10 = vld [vmem:[%s3452_s24 + $0x8] sm:$0xff]  ;;  %s2318_s12 = sshll.u32 %s297_s10, 6  ;;  %s3939_s9 = scalar_lea.sflag [#allocation3], %s297_s10 }
  0x18   : > { %2722 = vmatprep.subr.bf16.mxu1 %v3034_v5  ;;  %v3462_v11 = vpack.c.bf16 %v309_v10, %v3458_v9  ;;  %v3038_v12 = vld [vmem:[%s3981_s2 + $0x40] ss:$8 sps:$4 sm:$0xff]   ;;  %v3031_v13 = vld [vmem:[%s3980_s1 + $0x10] ss:$8 sps:$4 sm:$0xff]   ;;  %v3039_v29 = vld [vmem:[%s3980_s1 + $0x54] ss:$8 sps:$4 sm:$0xff]  }
  0x19   : > { %2699 = vmatpush3.bf16.msra.mxu0 %v3026_v1  ;;  %v3040_v14 = vld [vmem:[%s3981_s2 + $0x30] ss:$8 sps:$4 sm:$0xff]   ;;  %v3032_v15 = vld [vmem:[%s3980_s1] ss:$8 sps:$4 sm:$0xff]   ;;  %v3049_v30 = vld [vmem:[%s3981_s2 + $0x74] ss:$8 sps:$4 sm:$0xff]  }
  0x1a   : > { %2700 = vmatprep.subr.bf16.mxu0 %v3027_v2  ;;  %2712 = vmatprep.mubr.bf16.mxu0 %v3462_v11  ;;  %v3479_v16 = vld [vmem:[%s3452_s24 + $0x10] sm:$0xff]  ;;  %v3042_v17 = vld [vmem:[%s3981_s2 + $0x20] ss:$8 sps:$4 sm:$0xff]   ;;  %v3485_v18 = vld [vmem:[%s3452_s24 + $0x18] sm:$0xff]  ;;  %s299_s13 = scalar_lea.vmem [#allocation2], %s2318_s12 }
  0x1b   : > { %2723 = vmatpush3.bf16.msra.mxu1 %v3034_v5  ;;  %2736 = vmatprep.mubr.bf16.mxu1 %v3462_v11  ;;  %v3491_v20 = vld [vmem:[%s3452_s24 + $0x20] sm:$0xff]  ;;  %v3494_v21 = vld [vmem:[%s3452_s24 + $0x28] sm:$0xff]  ;;  %v3044_v22 = vld [vmem:[%s3981_s2 + $0x10] ss:$8 sps:$4 sm:$0xff]   ;;  %v3501_v23 = vpack.c.bf16 %v3485_v18, %v3479_v16  ;;  %s2252_s18 = sshll.u32 %s299_s13, 4  ;;  %s3935_s18 = int_to_ptr.vmem [resolvable:$true] %s2252_s18 }
  0x1c   : > { %2724 = vmatprep.subr.bf16.mxu1 %v3036_v7  ;;  %v3505_v24 = vpack.c.bf16 %v3494_v21, %v3491_v20  ;;  %v3511_v26 = vld [vmem:[%s3452_s24 + $0x30] sm:$0xff]  ;;  %v3514_v27 = vld [vmem:[%s3452_s24 + $0x38] sm:$0xff]  ;;  %v3046_v28 = vld [vmem:[%s3981_s2] ss:$8 sps:$4 sm:$0xff]   ;;  %s3266_s22 = scalar_lea.vmem %s3935_s18, 1024 }
  0x1d   : > { %2701 = vmatpush3.bf16.msra.mxu0 %v3027_v2  ;;  %v319_v31 = vpack.c.bf16 %v3514_v27, %v3511_v26  ;;  %v3041_v32 = vld [vmem:[%s3980_s1 + $0x44] ss:$8 sps:$4 sm:$0xff]   ;;  %v3043_v34 = vld [vmem:[%s3980_s1 + $0x34] ss:$8 sps:$4 sm:$0xff]   ;;  %p3267_p11 = scmp.ne.s32.totalorder %s3935_s18, %s3266_s22 }
  0x1e   : > { %2702 = vmatprep.subr.bf16.mxu0 %v3028_v3  ;;  %v3050_v33 = vld [vmem:[%s3981_s2 + $0x64] ss:$8 sps:$4 sm:$0xff]   ;;  %v3051_v35 = vld [vmem:[%s3981_s2 + $0x54] ss:$8 sps:$4 sm:$0xff]  }
  0x1f   : > { %2725 = vmatpush3.bf16.msra.mxu1 %v3036_v7  ;;  %v3045_v36 = vld [vmem:[%s3980_s1 + $0x24] ss:$8 sps:$4 sm:$0xff]   ;;  %v3047_v38 = vld [vmem:[%s3980_s1 + $0x14] ss:$8 sps:$4 sm:$0xff]   ;;  %p3268_p12 = pnand %p3267_p11, %p3414_p5 }
  0x20   : > { %2726 = vmatprep.subr.bf16.mxu1 %v3038_v12  ;;  %v3052_v37 = vld [vmem:[%s3981_s2 + $0x44] ss:$8 sps:$4 sm:$0xff]   ;;  %v3053_v39 = vld [vmem:[%s3981_s2 + $0x34] ss:$8 sps:$4 sm:$0xff]  }
  0x21   : > { %2703 = vmatpush3.bf16.msra.mxu0 %v3028_v3  ;;  %v3048_v40 = vld [vmem:[%s3980_s1 + $0x4] ss:$8 sps:$4 sm:$0xff]   ;;  %v3055_v42 = vld [vmem:[%s3981_s2 + $0x14] ss:$8 sps:$4 sm:$0xff]   ;;  %p3269_p13 = pneg %p3268_p12 }
  0x22   : > { %2704 = vmatprep.subr.bf16.mxu0 %v3029_v6  ;;  %v3054_v41 = vld [vmem:[%s3981_s2 + $0x24] ss:$8 sps:$4 sm:$0xff]   ;;  %v3057_v44 = vld [vmem:[%s3982_s3 + $0x38] sm:$0xff]   ;;  %v3058_v45 = vld [vmem:[%s3982_s3 + $0x30] sm:$0xff]  }
  0x23   : > { %2727 = vmatpush3.bf16.msra.mxu1 %v3038_v12  ;;  %v3056_v43 = vld [vmem:[%s3981_s2 + $0x4] ss:$8 sps:$4 sm:$0xff]   ;;  %v3061_v48 = vld [vmem:[%s3982_s3 + $0x18] sm:$0xff]   ;;  %v3062_v49 = vld [vmem:[%s3982_s3 + $0x10] sm:$0xff]  }
  0x24   : > { %2728 = vmatprep.subr.bf16.mxu1 %v3040_v14  ;;  %v3059_v46 = vld [vmem:[%s3982_s3 + $0x28] sm:$0xff]   ;;  %v3060_v47 = vld [vmem:[%s3982_s3 + $0x20] sm:$0xff]   ;;  %v3065_v52 = vld [vmem:[%s3982_s3 + $0x78] sm:$0xff]  }
  0x25   : > { %2705 = vmatpush3.bf16.msra.mxu0 %v3029_v6  ;;  %v3063_v50 = vld [vmem:[%s3982_s3 + $0x8] sm:$0xff]   ;;  %v3064_v51 = vld [vmem:[%s3982_s3] sm:$0xff]   ;;  %v3066_v53 = vld [vmem:[%s3982_s3 + $0x70] sm:$0xff]  }
  0x26   : > { %2706 = vmatprep.subr.bf16.mxu0 %v3030_v8  ;;  %v3067_v54 = vld [vmem:[%s3982_s3 + $0x68] sm:$0xff]   ;;  %v3068_v55 = vld [vmem:[%s3982_s3 + $0x60] sm:$0xff]   ;;  %v3069_v56 = vld [vmem:[%s3982_s3 + $0x58] sm:$0xff]  }
  0x27   : > { %2729 = vmatpush3.bf16.msra.mxu1 %v3040_v14  ;;  %v3070_v57 = vld [vmem:[%s3982_s3 + $0x50] sm:$0xff]   ;;  %v3071_v58 = vld [vmem:[%s3982_s3 + $0x48] sm:$0xff]   ;;  %v3072_v59 = vld [vmem:[%s3982_s3 + $0x40] sm:$0xff]  }
  0x28   : > { %2730 = vmatprep.subr.bf16.mxu1 %v3042_v17 }
  0x29   : > { %2707 = vmatpush3.bf16.msra.mxu0 %v3030_v8 }
  0x2a   : > { %2708 = vmatprep.subr.bf16.mxu0 %v3031_v13 }
  0x2b   : > { %2731 = vmatpush3.bf16.msra.mxu1 %v3042_v17 }
  0x2c   : > { %2732 = vmatprep.subr.bf16.mxu1 %v3044_v22 }
  0x2d   : > { %2709 = vmatpush3.bf16.msra.mxu0 %v3031_v13 }
  0x2e   : > { %2710 = vmatprep.subr.bf16.mxu0 %v3032_v15 }
  0x2f   : > { %2733 = vmatpush3.bf16.msra.mxu1 %v3044_v22 }
  0x30   : > { %2734 = vmatprep.subr.bf16.mxu1 %v3046_v28 }
  0x31   : > { %2711 = vmatpush3.bf16.msra.mxu0 %v3032_v15 }
  0x32   : > { %2744 = vmatprep.subr.bf16.mxu0 %v3035_v19 }
  0x33   : > { %2735 = vmatpush3.bf16.msra.mxu1 %v3046_v28 }
  0x34   : > { %2713 = vmatmul.mubr.bf16.vlgmr.msra.gmra.mxu0 %v3501_v23  ;;  %2768 = vmatprep.subr.bf16.mxu1 %v3049_v30 }
  0x35   : > { %2745 = vmatpush3.bf16.msra.mxu0 %v3035_v19  ;;  %2716 = vmatprep.mubr.bf16.mxu0 %v3505_v24 }
  0x36   : > { %2746 = vmatprep.subr.bf16.mxu0 %v3037_v25  ;;  %2737 = vmatmul.mubr.bf16.vlgmr.msra.gmra.mxu1 %v3501_v23 }
  0x37   : > { %2769 = vmatpush3.bf16.msra.mxu1 %v3049_v30  ;;  %2740 = vmatprep.mubr.bf16.mxu1 %v3505_v24 }
  0x38   : > { %2770 = vmatprep.subr.bf16.mxu1 %v3050_v33 }
  0x39   : > { %2747 = vmatpush3.bf16.msra.mxu0 %v3037_v25 }
  0x3a   : > { %2748 = vmatprep.subr.bf16.mxu0 %v3039_v29 }
  0x3b   : > { %2771 = vmatpush3.bf16.msra.mxu1 %v3050_v33 }
  0x3c   : > { %2717 = vmatmul.mubr.bf16.gmra.mxu0 %v319_v31  ;;  %2772 = vmatprep.subr.bf16.mxu1 %v3051_v35 }
  0x3d   : > { %2749 = vmatpush3.bf16.msra.mxu0 %v3039_v29  ;;  %2760 = vmatprep.mubr.bf16.mxu0 %v3462_v11 }
  0x3e   : > { %2750 = vmatprep.subr.bf16.mxu0 %v3041_v32  ;;  %2741 = vmatmul.mubr.bf16.gmra.mxu1 %v319_v31 }
  0x3f   : > { %2773 = vmatpush3.bf16.msra.mxu1 %v3051_v35  ;;  %2784 = vmatprep.mubr.bf16.mxu1 %v3462_v11 }
  0x40   : > { %2774 = vmatprep.subr.bf16.mxu1 %v3052_v37 }
  0x41   : > { %2751 = vmatpush3.bf16.msra.mxu0 %v3041_v32 }
  0x42   : > { %2752 = vmatprep.subr.bf16.mxu0 %v3043_v34 }
  0x43   : > { %2775 = vmatpush3.bf16.msra.mxu1 %v3052_v37 }
  0x44   : > { %2776 = vmatprep.subr.bf16.mxu1 %v3053_v39 }
  0x45   : > { %2753 = vmatpush3.bf16.msra.mxu0 %v3043_v34 }
  0x46   : > { %2754 = vmatprep.subr.bf16.mxu0 %v3045_v36 }
  0x47   : > { %2777 = vmatpush3.bf16.msra.mxu1 %v3053_v39 }
  0x48   : > { %2778 = vmatprep.subr.bf16.mxu1 %v3054_v41 }
  0x49   : > { %2755 = vmatpush3.bf16.msra.mxu0 %v3045_v36 }
  0x4a   : > { %2756 = vmatprep.subr.bf16.mxu0 %v3047_v38 }
  0x4b   : > { %2779 = vmatpush3.bf16.msra.mxu1 %v3054_v41 }
  0x4c   : > { %2780 = vmatprep.subr.bf16.mxu1 %v3055_v42 }
  0x4d   : > { %2757 = vmatpush3.bf16.msra.mxu0 %v3047_v38 }
  0x4e   : > { %2758 = vmatprep.subr.bf16.mxu0 %v3048_v40 }
  0x4f   : > { %2781 = vmatpush3.bf16.msra.mxu1 %v3055_v42 }
  0x50   : > { %2782 = vmatprep.subr.bf16.mxu1 %v3056_v43 }
  0x51   : > { %2759 = vmatpush3.bf16.msra.mxu0 %v3048_v40 }
  0x52   : > { %2792 = vmatprep.subr.bf16.mxu0 %v3065_v52 }
  0x53   : > { %2783 = vmatpush3.bf16.msra.mxu1 %v3056_v43 }
  0x54   : > { %2761 = vmatmul.mubr.bf16.vlgmr.msra.gmra.mxu0 %v3501_v23  ;;  %2816 = vmatprep.subr.bf16.mxu1 %v3057_v44 }
  0x55   : > { %2764 = vmatprep.mubr.bf16.mxu0 %v3505_v24  ;;  %2793 = vmatpush3.bf16.msra.mxu0 %v3065_v52 }
  0x56   : > { %2785 = vmatmul.mubr.bf16.vlgmr.msra.gmra.mxu1 %v3501_v23  ;;  %2794 = vmatprep.subr.bf16.mxu0 %v3066_v53 }
  0x57   : > { %2788 = vmatprep.mubr.bf16.mxu1 %v3505_v24  ;;  %2817 = vmatpush3.bf16.msra.mxu1 %v3057_v44 }
  0x58   : > { %2818 = vmatprep.subr.bf16.mxu1 %v3058_v45 }
  0x59   : > { %2795 = vmatpush3.bf16.msra.mxu0 %v3066_v53 }
  0x5a   : > { %2796 = vmatprep.subr.bf16.mxu0 %v3067_v54 }
  0x5b   : > { %2819 = vmatpush3.bf16.msra.mxu1 %v3058_v45 }
  0x5c   : > { %2765 = vmatmul.mubr.bf16.gmra.mxu0 %v319_v31  ;;  %2820 = vmatprep.subr.bf16.mxu1 %v3059_v46 }
  0x5d   : > { %2797 = vmatpush3.bf16.msra.mxu0 %v3067_v54 }
  0x5e   : > { %2789 = vmatmul.mubr.bf16.gmra.mxu1 %v319_v31  ;;  %2798 = vmatprep.subr.bf16.mxu0 %v3068_v55 }
  0x5f   : > { %2821 = vmatpush3.bf16.msra.mxu1 %v3059_v46 }
  0x60   : > { %2822 = vmatprep.subr.bf16.mxu1 %v3060_v47 }
  0x61   : > { %2799 = vmatpush3.bf16.msra.mxu0 %v3068_v55 }
  0x62   : > { %2800 = vmatprep.subr.bf16.mxu0 %v3069_v56 }
  0x63   : > { %2823 = vmatpush3.bf16.msra.mxu1 %v3060_v47 }
  0x64   : > { %2824 = vmatprep.subr.bf16.mxu1 %v3061_v48 }
  0x65   : > { %2801 = vmatpush3.bf16.msra.mxu0 %v3069_v56 }
  0x66   : > { %2802 = vmatprep.subr.bf16.mxu0 %v3070_v57 }
  0x67   : > { %2825 = vmatpush3.bf16.msra.mxu1 %v3061_v48 }
  0x68   : > { %2826 = vmatprep.subr.bf16.mxu1 %v3062_v49 }
  0x69   : > { %2803 = vmatpush3.bf16.msra.mxu0 %v3070_v57 }
  0x6a   : > { %2804 = vmatprep.subr.bf16.mxu0 %v3071_v58 }
  0x6b   : > { %2827 = vmatpush3.bf16.msra.mxu1 %v3062_v49 }
  0x6c   : > { %2828 = vmatprep.subr.bf16.mxu1 %v3063_v50 }
  0x6d   : > { %2805 = vmatpush3.bf16.msra.mxu0 %v3071_v58 }
  0x6e   : > { %2806 = vmatprep.subr.bf16.mxu0 %v3072_v59 }
  0x6f   : > { %2829 = vmatpush3.bf16.msra.mxu1 %v3063_v50 }
  0x70   : > { %2830 = vmatprep.subr.bf16.mxu1 %v3064_v51 }
  0x71   : > { %2807 = vmatpush3.bf16.msra.mxu0 %v3072_v59 }
  0x73   : > { %2831 = vmatpush3.bf16.msra.mxu1 %v3064_v51 }
  0xf4   : > { %v3621_v60 = vpop.f32.mrf.mxu0 }
  0xf5   : > { %v2339_v61 = vmul.f32 -1.442695, %v3621_v60 }
  0xf6   : > { %v418_v62 = vpop.f32.mrf.mxu0  ;;  %v2738_v22 = vpop.f32.mrf.mxu1 }
  0xf7   : > { %3121 = vpow2.f32 %v2339_v61  ;;  %v2337_v63 = vmul.f32 -1.442695, %v418_v62 }
  0xf8   : > { %v2715_v0 = vpop.f32.mrf.mxu0  ;;  %v547_v29 = vpop.f32.mrf.mxu1 }
  0xf9   : > { %3123 = vpow2.f32 %v2337_v63  ;;  %v2340_v1 = vmul.f32 -1.442695, %v2715_v0 }
  0xfa   : > { %v421_v2 = vpop.f32.mrf.mxu0  ;;  %v2739_v34 = vpop.f32.mrf.mxu1 }
  0xfb   : > { %3125 = vpow2.f32 %v2340_v1  ;;  %v2338_v3 = vmul.f32 -1.442695, %v421_v2 }
  0xfc   : > { %v3624_v4 = vpop.f32.mrf.mxu0  ;;  %v550_v39 = vpop.f32.mrf.mxu1 }
  0xfd   : > { %3127 = vpow2.f32 %v2338_v3  ;;  %v2343_v5 = vmul.f32 -1.442695, %v3624_v4 }
  0xfe   : > { %v3627_v6 = vpop.f32.mrf.mxu0  ;;  %v2742_v43 = vpop.f32.mrf.mxu1 }
  0xff   : > { %3129 = vpow2.f32 %v2343_v5  ;;  %v2341_v7 = vmul.f32 -1.442695, %v3627_v6 }
 0x100   : > { %v3630_v8 = vpop.f32.mrf.mxu0  ;;  %v563_v54 = vpop.f32.mrf.mxu1 }
 0x101   : > { %3131 = vpow2.f32 %v2341_v7  ;;  %v2344_v10 = vmul.f32 -1.442695, %v3630_v8 }
 0x102   : > { %v3633_v11 = vpop.f32.mrf.mxu0 }
 0x103   : > { %3133 = vpow2.f32 %v2344_v10  ;;  %v2342_v12 = vmul.f32 -1.442695, %v3633_v11 }
 0x104   : > { %v3122_v13 = vpop.eup %3121 }
 0x105   : > { %3135 = vpow2.f32 %v2342_v12  ;;  %v604_v15 = vadd.f32 1.0, %v3122_v13 }
 0x106   : > { %v3124_v14 = vpop.eup %3123 }
 0x107   : > { %v602_v17 = vadd.f32 1.0, %v3124_v14 }
 0x108   : > { %v3126_v19 = vpop.eup %3125 }
 0x109   : > { %3137 = vrcp.f32 %v602_v17  ;;  %v605_v23 = vadd.f32 1.0, %v3126_v19 }
 0x10a   : > { %v3128_v24 = vpop.eup %3127  ;;  %3139 = vrcp.f32 %v604_v15 }
 0x10b   : > { %3141 = vrcp.f32 %v605_v23  ;;  %v603_v25 = vadd.f32 1.0, %v3128_v24 }
 0x10c   : > { %v3130_v28 = vpop.eup %3129 }
 0x10d   : > { %3143 = vrcp.f32 %v603_v25  ;;  %v608_v31 = vadd.f32 1.0, %v3130_v28 }
 0x10e   : > { %v3132_v30 = vpop.eup %3131 }
 0x10f   : > { %v606_v32 = vadd.f32 1.0, %v3132_v30 }
 0x110   : > { %v3134_v33 = vpop.eup %3133 }
 0x111   : > { %3145 = vrcp.f32 %v606_v32  ;;  %v609_v35 = vadd.f32 1.0, %v3134_v33 }
 0x112   : > { %v3136_v36 = vpop.eup %3135  ;;  %3147 = vrcp.f32 %v608_v31 }
 0x113   : > { %3149 = vrcp.f32 %v609_v35  ;;  %v607_v37 = vadd.f32 1.0, %v3136_v36 }
 0x114   : > { %v3636_v38 = vpop.f32.mrf.mxu0 }
 0x115   : > { %3151 = vrcp.f32 %v607_v37  ;;  %v2395_v40 = vmul.f32 -1.442695, %v3636_v38 }
 0x116   : > { %v3138_v41 = vpop.eup %3137  ;;  %v3639_v42 = vpop.f32.mrf.mxu0 }
 0x117   : > { %v3140_v44 = vpop.eup %3139  ;;  %3153 = vpow2.f32 %v2395_v40  ;;  %v2393_v45 = vmul.f32 -1.442695, %v3639_v42  ;;  %v626_v48 = vmul.f32 %v3138_v41, %v418_v62 }
 0x118   : > { %v3142_v46 = vpop.eup %3141  ;;  %v3642_v47 = vpop.f32.mrf.mxu0  ;;  %v628_v52 = vmul.f32 %v3140_v44, %v3621_v60 }
 0x119   : > { %v629_v49 = vmul.f32 %v3142_v46, %v2715_v0  ;;  %3155 = vpow2.f32 %v2393_v45  ;;  %v2396_v50 = vmul.f32 -1.442695, %v3642_v47  ;;  %v634_v59 = vmul.f32 %v626_v48, %v547_v29  ;;  %v2743_v60 = vpop.f32.mrf.mxu1 }
 0x11a   : > { %v3144_v51 = vpop.eup %3143  ;;  %v3646_v53 = vpop.f32.mrf.mxu0  ;;  %v636_v63 = vmul.f32 %v2738_v22, %v628_v52 }
 0x11b   : > { %v627_v55 = vmul.f32 %v3144_v51, %v421_v2  ;;  %3157 = vpow2.f32 %v2396_v50  ;;  %v2394_v56 = vmul.f32 -1.442695, %v3646_v53  ;;  %v637_v57 = vmul.f32 %v2739_v34, %v629_v49  ;;  %v566_v23 = vpop.f32.mrf.mxu1 }
 0x11c   : > { %v3649_v58 = vpop.f32.mrf.mxu0 }
 0x11d   : > { %v635_v61 = vmul.f32 %v627_v55, %v550_v39  ;;  %3159 = vpow2.f32 %v2394_v56  ;;  %v2399_v0 = vmul.f32 -1.442695, %v3649_v58  ;;  %v643_v10 = vpack.c.bf16 %v637_v57, %v636_v63  ;;  %v2786_v36 = vpop.f32.mrf.mxu1 }
 0x11e   : > { %v3146_v62 = vpop.eup %3145  ;;  %v3652_v1 = vpop.f32.mrf.mxu0 }
 0x11f   : > { %v3148_v3 = vpop.eup %3147  ;;  %v642_v5 = vpack.c.bf16 %v635_v61, %v634_v59  ;;  %v2397_v2 = vmul.f32 -1.442695, %v3652_v1  ;;  %3161 = vpow2.f32 %v2399_v0  ;;  %v630_v13 = vmul.f32 %v3146_v62, %v3627_v6  ;;  %v891_v40 = vpop.f32.mrf.mxu1 }
 0x120   : > { %v3150_v7 = vpop.eup %3149  ;;  %v3655_v12 = vpop.f32.mrf.mxu0  ;;  %v632_v19 = vmul.f32 %v3148_v3, %v3624_v4 }
 0x121   : > { %v633_v14 = vmul.f32 %v3150_v7, %v3630_v8  ;;  %3163 = vpow2.f32 %v2397_v2  ;;  %v2400_v15 = vmul.f32 -1.442695, %v3655_v12  ;;  %2832 = vmatprep.mubr.bf16.mxu1 %v642_v5  ;;  %v638_v29 = vmul.f32 %v630_v13, %v563_v54  ;;  %v2787_v48 = vpop.f32.mrf.mxu1 }
 0x122   : > { %v3152_v17 = vpop.eup %3151  ;;  %v3661_v22 = vpop.f32.mrf.mxu0  ;;  %2833 = vmatmul.mubr.bf16.vlgmr.msra.gmra.mxu1 %v643_v10  ;;  %v640_v32 = vmul.f32 %v2742_v43, %v632_v19 }
 0x123   : > { %v631_v24 = vmul.f32 %v3152_v17, %v3633_v11  ;;  %3165 = vpow2.f32 %v2400_v15  ;;  %v2398_v25 = vmul.f32 -1.442695, %v3661_v22  ;;  %v641_v6 = vmul.f32 %v2743_v60, %v633_v14  ;;  %v894_v52 = vpop.f32.mrf.mxu1 }
 0x124   : > { %v3154_v28 = vpop.eup %3153 }
 0x125   : > { %3167 = vpow2.f32 %v2398_v25  ;;  %v639_v8 = vmul.f32 %v631_v24, %v566_v23  ;;  %v948_v31 = vadd.f32 1.0, %v3154_v28  ;;  %v645_v35 = vpack.c.bf16 %v641_v6, %v640_v32  ;;  %v2790_v55 = vpop.f32.mrf.mxu1 }
 0x126   : > { %v3156_v30 = vpop.eup %3155 }
 0x127   : > { %v946_v33 = vadd.f32 1.0, %v3156_v30  ;;  %v644_v34 = vpack.c.bf16 %v639_v8, %v638_v29  ;;  %v907_v0 = vpop.f32.mrf.mxu1 }
 0x128   : > { %v3158_v4 = vpop.eup %3157 }
 0x129   : > { %3169 = vrcp.f32 %v946_v33  ;;  %v949_v37 = vadd.f32 1.0, %v3158_v4  ;;  %2836 = vmatprep.mubr.bf16.mxu1 %v644_v34  ;;  %v2791_v13 = vpop.f32.mrf.mxu1 }
 0x12a   : > { %v3160_v11 = vpop.eup %3159  ;;  %3171 = vrcp.f32 %v948_v31  ;;  %2837 = vmatmul.mubr.bf16.gmra.mxu1 %v645_v35 }
 0x12b   : > { %3173 = vrcp.f32 %v949_v37  ;;  %v947_v39 = vadd.f32 1.0, %v3160_v11 }
 0x12c   : > { %v3162_v41 = vpop.eup %3161 }
 0x12d   : > { %3175 = vrcp.f32 %v947_v39  ;;  %v952_v45 = vadd.f32 1.0, %v3162_v41 }
 0x12e   : > { %v3164_v44 = vpop.eup %3163 }
 0x12f   : > { %v950_v46 = vadd.f32 1.0, %v3164_v44 }
 0x130   : > { %v3166_v43 = vpop.eup %3165 }
 0x131   : > { %3177 = vrcp.f32 %v950_v46  ;;  %v953_v49 = vadd.f32 1.0, %v3166_v43 }
 0x132   : > { %v3168_v50 = vpop.eup %3167  ;;  %3179 = vrcp.f32 %v952_v45 }
 0x133   : > { %3181 = vrcp.f32 %v953_v49  ;;  %v951_v51 = vadd.f32 1.0, %v3168_v50  ;;  %v3265_v49 = vld [vmem:[%s3452_s24 + $0x8] sm:$0xff]  ;;  %s3270_s24 = sshll.u32 %s3328_s23, 4  ;;  %s3271_s24 = int_to_ptr.vmem [resolvable:$false] %s3270_s24 }
 0x134   : > { %s3272_s25 = scalar_lea.vmem %s3271_s24, 2048  ;;  %p3273_p0 = scmp.lt.s32.totalorder %s3935_s18, %s3271_s24 }
 0x135   : > { %3183 = vrcp.f32 %v951_v51  ;;  %p3274_p1 = scmp.lt.s32.totalorder %s3272_s25, %s3266_s22 }
 0x136   : > { %v3170_v54 = vpop.eup %3169 }
 0x137   : > { %v3172_v56 = vpop.eup %3171  ;;  %v970_v59 = vmul.f32 %v3170_v54, %v3639_v42  ;;  %p3275_p2 = por %p3274_p1, %p3273_p0 }
 0x138   : > { %v3174_v57 = vpop.eup %3173  ;;  %v972_v63 = vmul.f32 %v3172_v56, %v3636_v38 }
 0x139   : > { %v973_v61 = vmul.f32 %v3174_v57, %v3642_v47  ;;  %v978_v5 = vmul.f32 %v970_v59, %v891_v40  ;;  %p3276_p3 = pnand %p3275_p2, %p3269_p13 }
 0x13a   : > { %v3176_v62 = vpop.eup %3175  ;;  %v980_v10 = vmul.f32 %v2786_v36, %v972_v63 }
 0x13b   : > { %v971_v60 = vmul.f32 %v3176_v62, %v3646_v53  ;;  %v981_v3 = vmul.f32 %v2787_v48, %v973_v61  ;;  %v910_v53 = vpop.f32.mrf.mxu1 }
 0x13d   : > { %v979_v2 = vmul.f32 %v971_v60, %v894_v52  ;;  %v987_v19 = vpack.c.bf16 %v981_v3, %v980_v10 }
 0x13e   : > { %v3178_v7 = vpop.eup %3177 }
 0x13f   : > { %v3180_v14 = vpop.eup %3179  ;;  %v986_v15 = vpack.c.bf16 %v979_v2, %v978_v5  ;;  %v974_v42 = vmul.f32 %v3178_v7, %v3652_v1  ;;  %v3073_v1 = vld [vmem:[%s3984_s5 + $0x70] ss:$8 sps:$4 sm:$0xff]   ;;  %v3076_v5 = vld [vmem:[%s3985_s6 + $0x60] ss:$8 sps:$4 sm:$0xff]  }
 0x140   : > { %v3182_v17 = vpop.eup %3181  ;;  %v976_v38 = vmul.f32 %v3180_v14, %v3649_v58  ;;  %v3074_v58 = vld [vmem:[%s3985_s6 + $0x70] ss:$8 sps:$4 sm:$0xff]   ;;  %2840 = vmatprep.subr.bf16.mxu0 %v3073_v1  ;;  %v3080_v14 = vld [vmem:[%s3985_s6 + $0x40] ss:$8 sps:$4 sm:$0xff]  }
 0x141   : > { %v977_v47 = vmul.f32 %v3182_v17, %v3655_v12  ;;  %2808 = vmatprep.mubr.bf16.mxu0 %v986_v15  ;;  %v982_v28 = vmul.f32 %v974_v42, %v907_v0  ;;  %2864 = vmatprep.subr.bf16.mxu1 %v3074_v58  ;;  %v3081_v15 = vld [vmem:[%s3984_s5 + $0x30] ss:$8 sps:$4 sm:$0xff]   ;;  %v3084_v42 = vld [vmem:[%s3985_s6 + $0x20] ss:$8 sps:$4 sm:$0xff]  }
 0x142   : > { %v3184_v23 = vpop.eup %3183  ;;  %2809 = vmatmul.mubr.bf16.vlgmr.msra.gmra.mxu0 %v987_v19  ;;  %v984_v29 = vmul.f32 %v2790_v55, %v976_v38  ;;  %2865 = vmatpush3.bf16.msra.mxu1 %v3074_v58  ;;  %v3082_v17 = vld [vmem:[%s3985_s6 + $0x30] ss:$8 sps:$4 sm:$0xff]   ;;  %v3083_v19 = vld [vmem:[%s3984_s5 + $0x20] ss:$8 sps:$4 sm:$0xff]  }
 0x143   : > { %v975_v24 = vmul.f32 %v3184_v23, %v3661_v22  ;;  %v985_v25 = vmul.f32 %v2791_v13, %v977_v47  ;;  %2841 = vmatpush3.bf16.msra.mxu0 %v3073_v1  ;;  %2866 = vmatprep.subr.bf16.mxu1 %v3076_v5  ;;  %v3079_v13 = vld [vmem:[%s3984_s5 + $0x40] ss:$8 sps:$4 sm:$0xff]   ;;  %v3085_v47 = vld [vmem:[%s3984_s5 + $0x10] ss:$8 sps:$4 sm:$0xff]  }
 0x144   : > { %v3086_v23 = vld [vmem:[%s3985_s6 + $0x10] ss:$8 sps:$4 sm:$0xff]   ;;  %v3087_v38 = vld [vmem:[%s3984_s5] ss:$8 sps:$4 sm:$0xff]  }
 0x145   : > { %v983_v6 = vmul.f32 %v975_v24, %v910_v53  ;;  %v989_v30 = vpack.c.bf16 %v985_v25, %v984_v29  ;;  %v3088_v53 = vld [vmem:[%s3985_s6] ss:$8 sps:$4 sm:$0xff]   ;;  %v3089_v24 = vld [vmem:[%s3984_s5 + $0x74] ss:$8 sps:$4 sm:$0xff]  }
 0x146   : > { %2867 = vmatpush3.bf16.msra.mxu1 %v3076_v5  ;;  %v3090_v25 = vld [vmem:[%s3985_s6 + $0x74] ss:$8 sps:$4 sm:$0xff]  }
 0x147   : > { %v988_v8 = vpack.c.bf16 %v983_v6, %v982_v28 }
 0x149   : > { %2812 = vmatprep.mubr.bf16.mxu0 %v988_v8 }
 0x14a   : > { %2813 = vmatmul.mubr.bf16.gmra.mxu0 %v989_v30 }
 0x1e2   : > { %v2834_v12 = vpop.f32.mrf.mxu1 }
 0x1e4   : > { %v1202_v22 = vpop.f32.mrf.mxu1 }
 0x1e6   : > { %v2835_v31 = vpop.f32.mrf.mxu1 }
 0x1e8   : > { %v1205_v32 = vpop.f32.mrf.mxu1 }
 0x1ea   : > { %v2838_v4 = vpop.f32.mrf.mxu1 }
 0x1ec   : > { %v1218_v44 = vpop.f32.mrf.mxu1 }
 0x202   : > { %v2810_v33 = vpop.f32.mrf.mxu0 }
 0x203   : > { %v1211_v34 = vadd.f32 %v2834_v12, %v2810_v33 }
 0x204   : > { %v1089_v35 = vpop.f32.mrf.mxu0 }
 0x205   : > { %v1203_v36 = vadd.f32 %v1202_v22, %v1089_v35  ;;  %v3680_v37 = vadd.f32 %v1211_v34, %v3479_v16 }
 0x206   : > { %v2811_v11 = vpop.f32.mrf.mxu0 }
 0x207   : > { %v1214_v39 = vadd.f32 %v2835_v31, %v2811_v11  ;;  %v1243_v40 = vmul.f32 %v3680_v37, %v3680_v37  ;;  %v3685_v41 = vadd.f32 %v1203_v36, %v3458_v9  ;;  %v2839_v9 = vpop.f32.mrf.mxu1 }
 0x208   : > { %v1092_v45 = vpop.f32.mrf.mxu0 }
 0x209   : > { %v3688_v46 = vadd.f32 %v1214_v39, %v3485_v18  ;;  %v1206_v43 = vadd.f32 %v1205_v32, %v1092_v45  ;;  %1253 = vadd.xlane.f32.xlu1 %v1243_v40  ;;  %v1241_v48 = vmul.f32 %v3685_v41, %v3685_v41  ;;  %v1221_v59 = vpop.f32.mrf.mxu1 }
 0x20a   : > { %v2814_v16 = vpop.f32.mrf.mxu0 }
 0x20b   : > { %v3693_v50 = vadd.f32 %v3265_v49, %v1206_v43  ;;  %1249 = vadd.xlane.f32.xlu0 %v1241_v48  ;;  %v1244_v51 = vmul.f32 %v3688_v46, %v3688_v46  ;;  %v1227_v54 = vadd.f32 %v2838_v4, %v2814_v16 }
 0x20c   : > { %v1105_v52 = vpop.f32.mrf.mxu0 }
 0x20d   : > { %v1219_v55 = vadd.f32 %v1218_v44, %v1105_v52  ;;  %1255 = vadd.xlane.f32.xlu1 %v1244_v51  ;;  %v1242_v18 = vmul.f32 %v3693_v50, %v3693_v50  ;;  %v3703_v62 = vadd.f32 %v1227_v54, %v3511_v26 }
 0x20e   : > { %v2815_v56 = vpop.f32.mrf.mxu0 }
 0x20f   : > { %v3700_v57 = vadd.f32 %v1219_v55, %v3491_v20  ;;  %1251 = vadd.xlane.f32.xlu0 %v1242_v18  ;;  %v1230_v63 = vadd.f32 %v2839_v9, %v2815_v56  ;;  %v3075_v20 = vld [vmem:[%s3984_s5 + $0x60] ss:$8 sps:$4 sm:$0xff]   ;;  %v1247_v7 = vmul.f32 %v3703_v62, %v3703_v62 }
 0x210   : > { %v1108_v61 = vpop.f32.mrf.mxu0  ;;  %2842 = vmatprep.subr.bf16.mxu0 %v3075_v20 }
 0x211   : > { %v1222_v0 = vadd.f32 %v1221_v59, %v1108_v61  ;;  %v1245_v60 = vmul.f32 %v3700_v57, %v3700_v57  ;;  %v3717_v26 = vadd.f32 %v1230_v63, %v3514_v27  ;;  %2843 = vmatpush3.bf16.msra.mxu0 %v3075_v20  ;;  %v3078_v27 = vld [vmem:[%s3985_s6 + $0x50] ss:$8 sps:$4 sm:$0xff]   ;;  %v2433_v59 = vld [vmem:[%s3983_s4] ss:$0 sm:$0xff] }
 0x212   : > { %2868 = vmatprep.subr.bf16.mxu1 %v3078_v27 }
 0x213   : > { %v3708_v3 = vadd.f32 %v1222_v0, %v3494_v21  ;;  %1257 = vadd.xlane.f32.xlu0 %v1245_v60  ;;  %v3077_v21 = vld [vmem:[%s3984_s5 + $0x50] ss:$8 sps:$4 sm:$0xff]   ;;  %v1248_v10 = vmul.f32 %v3717_v26, %v3717_v26  ;;  %2869 = vmatpush3.bf16.msra.mxu1 %v3078_v27  ;;  %v3093_v27 = vld [vmem:[%s3984_s5 + $0x54] ss:$8 sps:$4 sm:$0xff]  }
 0x214   : > { %2844 = vmatprep.subr.bf16.mxu0 %v3077_v21  ;;  %2870 = vmatprep.subr.bf16.mxu1 %v3080_v14 }
 0x215   : > { %v1246_v2 = vmul.f32 %v3708_v3, %v3708_v3  ;;  %2845 = vmatpush3.bf16.msra.mxu0 %v3077_v21 }
 0x216   : > { %2846 = vmatprep.subr.bf16.mxu0 %v3079_v13 }
 0x217   : > { %1259 = vadd.xlane.f32.xlu1 %v1246_v2  ;;  %1261 = vadd.xlane.f32.xlu0 %v1247_v7 }
 0x218   : > { %2871 = vmatpush3.bf16.msra.mxu1 %v3080_v14 }
 0x219   : > { %2847 = vmatpush3.bf16.msra.mxu0 %v3079_v13  ;;  %2872 = vmatprep.subr.bf16.mxu1 %v3082_v17 }
 0x21a   : > { %2848 = vmatprep.subr.bf16.mxu0 %v3081_v15 }
 0x21b   : > { %1263 = vadd.xlane.f32.xlu1 %v1248_v10 }
 0x21c   : > { %2873 = vmatpush3.bf16.msra.mxu1 %v3082_v17 }
 0x21d   : > { %2849 = vmatpush3.bf16.msra.mxu0 %v3081_v15  ;;  %2874 = vmatprep.subr.bf16.mxu1 %v3084_v42 }
 0x21e   : > { %2850 = vmatprep.subr.bf16.mxu0 %v3083_v19 }
 0x220   : > { %2875 = vmatpush3.bf16.msra.mxu1 %v3084_v42  ;;  %v3096_v42 = vld [vmem:[%s3985_s6 + $0x44] ss:$8 sps:$4 sm:$0xff]  }
 0x221   : > { %2851 = vmatpush3.bf16.msra.mxu0 %v3083_v19  ;;  %2876 = vmatprep.subr.bf16.mxu1 %v3086_v23  ;;  %v3095_v19 = vld [vmem:[%s3984_s5 + $0x44] ss:$8 sps:$4 sm:$0xff]  }
 0x222   : > { %2852 = vmatprep.subr.bf16.mxu0 %v3085_v47 }
 0x224   : > { %2877 = vmatpush3.bf16.msra.mxu1 %v3086_v23 }
 0x225   : > { %2853 = vmatpush3.bf16.msra.mxu0 %v3085_v47  ;;  %2878 = vmatprep.subr.bf16.mxu1 %v3088_v53 }
 0x226   : > { %2854 = vmatprep.subr.bf16.mxu0 %v3087_v38 }
 0x228   : > { %2879 = vmatpush3.bf16.msra.mxu1 %v3088_v53  ;;  %v3099_v53 = vld [vmem:[%s3984_s5 + $0x24] ss:$8 sps:$4 sm:$0xff]  }
 0x229   : > { %2855 = vmatpush3.bf16.msra.mxu0 %v3087_v38  ;;  %2912 = vmatprep.subr.bf16.mxu1 %v3090_v25  ;;  %v3098_v38 = vld [vmem:[%s3985_s6 + $0x34] ss:$8 sps:$4 sm:$0xff]  }
 0x22a   : > { %2888 = vmatprep.subr.bf16.mxu0 %v3089_v24 }
 0x292   : > { %v1254_v28 = vpop.xlane.xlu1 %1253 }
 0x293   : > { %v1268_v6 = vmul.f32 0.0078125, %v1254_v28  ;;  %v3102_v28 = vld [vmem:[%s3985_s6 + $0x14] ss:$8 sps:$4 sm:$0xff]  }
 0x294   : > { %v1250_v29 = vpop.xlane.xlu0 %1249 }
 0x295   : > { %v1266_v8 = vmul.f32 0.0078125, %v1250_v29  ;;  %v1276_v30 = vadd.f32 1e-06, %v1268_v6  ;;  %v3103_v6 = vld [vmem:[%s3984_s5 + $0x4] ss:$8 sps:$4 sm:$0xff]  }
 0x296   : > { %v1256_v1 = vpop.xlane.xlu1 %1255  ;;  %v3104_v29 = vld [vmem:[%s3985_s6 + $0x4] ss:$8 sps:$4 sm:$0xff]  }
 0x297   : > { %v1274_v58 = vadd.f32 1e-06, %v1266_v8  ;;  %v1269_v12 = vmul.f32 0.0078125, %v1256_v1  ;;  %v3105_v8 = vld [vmem:[%s3986_s7 + $0x38] sm:$0xff]   ;;  %v3107_v1 = vld [vmem:[%s3986_s7 + $0x28] sm:$0xff]  }
 0x298   : > { %v1252_v22 = vpop.xlane.xlu0 %1251 }
 0x299   : > { %3185 = vrsqrt.f32 %v1274_v58  ;;  %v1277_v31 = vadd.f32 1e-06, %v1269_v12  ;;  %v1267_v32 = vmul.f32 0.0078125, %v1252_v22  ;;  %v3108_v58 = vld [vmem:[%s3986_s7 + $0x20] sm:$0xff]   ;;  %v3109_v12 = vld [vmem:[%s3986_s7 + $0x18] sm:$0xff]   ;;  %v3110_v22 = vld [vmem:[%s3986_s7 + $0x10] sm:$0xff]  }
 0x29a   : > { %3187 = vrsqrt.f32 %v1276_v30  ;;  %v3106_v30 = vld [vmem:[%s3986_s7 + $0x30] sm:$0xff]  }
 0x29b   : > { %3189 = vrsqrt.f32 %v1277_v31  ;;  %v1275_v33 = vadd.f32 1e-06, %v1267_v32  ;;  %v3111_v31 = vld [vmem:[%s3986_s7 + $0x8] sm:$0xff]   ;;  %v3112_v32 = vld [vmem:[%s3986_s7] sm:$0xff]  }
 0x29c   : > { %v1258_v34 = vpop.xlane.xlu0 %1257 }
 0x29d   : > { %3191 = vrsqrt.f32 %v1275_v33  ;;  %v1270_v4 = vmul.f32 0.0078125, %v1258_v34  ;;  %v3113_v33 = vld [vmem:[%s3986_s7 + $0x78] sm:$0xff]   ;;  %v3114_v34 = vld [vmem:[%s3986_s7 + $0x70] sm:$0xff]  }
 0x29f   : > { %v1278_v35 = vadd.f32 1e-06, %v1270_v4  ;;  %v3115_v4 = vld [vmem:[%s3986_s7 + $0x68] sm:$0xff]  }
 0x2a0   : > { %v1260_v36 = vpop.xlane.xlu1 %1259  ;;  %v1262_v11 = vpop.xlane.xlu0 %1261 }
 0x2a1   : > { %3193 = vrsqrt.f32 %v1278_v35  ;;  %v1271_v39 = vmul.f32 0.0078125, %v1260_v36  ;;  %v1272_v40 = vmul.f32 0.0078125, %v1262_v11  ;;  %v3116_v35 = vld [vmem:[%s3986_s7 + $0x60] sm:$0xff]   ;;  %v3117_v36 = vld [vmem:[%s3986_s7 + $0x58] sm:$0xff]   ;;  %v3118_v11 = vld [vmem:[%s3986_s7 + $0x50] sm:$0xff]  }
 0x2a3   : > { %v1279_v44 = vadd.f32 1e-06, %v1271_v39  ;;  %v1280_v45 = vadd.f32 1e-06, %v1272_v40  ;;  %v3119_v39 = vld [vmem:[%s3986_s7 + $0x48] sm:$0xff]   ;;  %v3120_v40 = vld [vmem:[%s3986_s7 + $0x40] sm:$0xff]  }
 0x2a4   : > { %v1264_v43 = vpop.xlane.xlu1 %1263 }
 0x2a5   : > { %3195 = vrsqrt.f32 %v1279_v44  ;;  %v1273_v48 = vmul.f32 0.0078125, %v1264_v43 }
 0x2a6   : > { %v3186_v16 = vpop.eup %3185  ;;  %3197 = vrsqrt.f32 %v1280_v45 }
 0x2a7   : > { %v3188_v49 = vpop.eup %3187  ;;  %v1281_v51 = vadd.f32 1e-06, %v1273_v48  ;;  %v1290_v54 = vmul.f32 %v3186_v16, %v3685_v41  ;;  %v3091_v41 = vld [vmem:[%s3984_s5 + $0x64] ss:$8 sps:$4 sm:$0xff]  }
 0x2a8   : > { %v3190_v9 = vpop.eup %3189  ;;  %v1292_v18 = vmul.f32 %v3188_v49, %v3680_v37  ;;  %v3092_v37 = vld [vmem:[%s3985_s6 + $0x64] ss:$8 sps:$4 sm:$0xff]  }
 0x2a9   : > { %v1293_v52 = vmul.f32 %v3190_v9, %v3688_v46  ;;  %3199 = vrsqrt.f32 %v1281_v51  ;;  %v1305_v63 = vmul.f32 %v2433_v59, %v1290_v54 }
 0x2aa   : > { %v3192_v55 = vpop.eup %3191  ;;  %v1307_v20 = vmul.f32 %v2433_v59, %v1292_v18 }
 0x2ab   : > { %v1291_v56 = vmul.f32 %v3192_v55, %v3693_v50  ;;  %v1308_v61 = vmul.f32 %v2433_v59, %v1293_v52 }
 0x2ad   : > { %v1306_v0 = vmul.f32 %v2433_v59, %v1291_v56  ;;  %v3774_v2 = vpack.c.bf16 %v1308_v61, %v1307_v20 }
 0x2ae   : > { %v3194_v60 = vpop.eup %3193 }
 0x2af   : > { %v1313_v5 = vpack.c.bf16 %v1306_v0, %v1305_v63  ;;  %v1294_v46 = vmul.f32 %v3194_v60, %v3700_v57  ;;  %v3094_v57 = vld [vmem:[%s3985_s6 + $0x54] ss:$8 sps:$4 sm:$0xff]  }
 0x2b1   : > { %2856 = vmatprep.mubr.bf16.mxu0 %v1313_v5  ;;  %2880 = vmatprep.mubr.bf16.mxu1 %v1313_v5  ;;  %v1309_v10 = vmul.f32 %v2433_v59, %v1294_v46 }
 0x2b2   : > { %v3196_v50 = vpop.eup %3195  ;;  %2857 = vmatmul.mubr.bf16.vlgmr.msra.gmra.mxu0 %v3774_v2  ;;  %2881 = vmatmul.mubr.bf16.vlgmr.msra.gmra.mxu1 %v3774_v2 }
 0x2b3   : > { %v3198_v7 = vpop.eup %3197  ;;  %2889 = vmatpush3.bf16.msra.mxu0 %v3089_v24  ;;  %2913 = vmatpush3.bf16.msra.mxu1 %v3090_v25  ;;  %v1295_v21 = vmul.f32 %v3196_v50, %v3708_v3  ;;  %v3100_v24 = vld [vmem:[%s3985_s6 + $0x24] ss:$8 sps:$4 sm:$0xff]   ;;  %v3101_v25 = vld [vmem:[%s3984_s5 + $0x14] ss:$8 sps:$4 sm:$0xff]  }
 0x2b4   : > { %2890 = vmatprep.subr.bf16.mxu0 %v3091_v41  ;;  %2914 = vmatprep.subr.bf16.mxu1 %v3092_v37  ;;  %v1296_v14 = vmul.f32 %v3198_v7, %v3703_v62 }
 0x2b5   : > { %v1310_v13 = vmul.f32 %v2433_v59, %v1295_v21 }
 0x2b6   : > { %v3200_v15 = vpop.eup %3199  ;;  %v1311_v47 = vmul.f32 %v2433_v59, %v1296_v14 }
 0x2b7   : > { %2891 = vmatpush3.bf16.msra.mxu0 %v3091_v41  ;;  %2915 = vmatpush3.bf16.msra.mxu1 %v3092_v37  ;;  %v1315_v17 = vpack.c.bf16 %v1310_v13, %v1309_v10  ;;  %v1297_v3 = vmul.f32 %v3200_v15, %v3717_v26  ;;  %v3097_v26 = vld [vmem:[%s3984_s5 + $0x34] ss:$8 sps:$4 sm:$0xff]  }
 0x2b8   : > { %2892 = vmatprep.subr.bf16.mxu0 %v3093_v27  ;;  %2916 = vmatprep.subr.bf16.mxu1 %v3094_v57 }
 0x2b9   : > { %2860 = vmatprep.mubr.bf16.mxu0 %v1315_v17  ;;  %2884 = vmatprep.mubr.bf16.mxu1 %v1315_v17  ;;  %v1312_v62 = vmul.f32 %v2433_v59, %v1297_v3 }
 0x2bb   : > { %2893 = vmatpush3.bf16.msra.mxu0 %v3093_v27  ;;  %2917 = vmatpush3.bf16.msra.mxu1 %v3094_v57  ;;  %v1316_v23 = vpack.c.bf16 %v1312_v62, %v1311_v47 }
 0x2bc   : > { %2894 = vmatprep.subr.bf16.mxu0 %v3095_v19  ;;  %2918 = vmatprep.subr.bf16.mxu1 %v3096_v42 }
 0x2bd   : > { %2861 = vmatmul.mubr.bf16.gmra.mxu0 %v1316_v23  ;;  %2885 = vmatmul.mubr.bf16.gmra.mxu1 %v1316_v23 }
 0x2be   : > { %2904 = vmatprep.mubr.bf16.mxu0 %v1313_v5  ;;  %2928 = vmatprep.mubr.bf16.mxu1 %v1313_v5 }
 0x2bf   : > { %2895 = vmatpush3.bf16.msra.mxu0 %v3095_v19  ;;  %2919 = vmatpush3.bf16.msra.mxu1 %v3096_v42 }
 0x2c0   : > { %2896 = vmatprep.subr.bf16.mxu0 %v3097_v26  ;;  %2920 = vmatprep.subr.bf16.mxu1 %v3098_v38 }
 0x2c3   : > { %2897 = vmatpush3.bf16.msra.mxu0 %v3097_v26  ;;  %2921 = vmatpush3.bf16.msra.mxu1 %v3098_v38 }
 0x2c4   : > { %2898 = vmatprep.subr.bf16.mxu0 %v3099_v53  ;;  %2922 = vmatprep.subr.bf16.mxu1 %v3100_v24 }
 0x2c7   : > { %2899 = vmatpush3.bf16.msra.mxu0 %v3099_v53  ;;  %2923 = vmatpush3.bf16.msra.mxu1 %v3100_v24 }
 0x2c8   : > { %2900 = vmatprep.subr.bf16.mxu0 %v3101_v25  ;;  %2924 = vmatprep.subr.bf16.mxu1 %v3102_v28 }
 0x2cb   : > { %2901 = vmatpush3.bf16.msra.mxu0 %v3101_v25  ;;  %2925 = vmatpush3.bf16.msra.mxu1 %v3102_v28 }
 0x2cc   : > { %2902 = vmatprep.subr.bf16.mxu0 %v3103_v6  ;;  %2926 = vmatprep.subr.bf16.mxu1 %v3104_v29 }
 0x2cf   : > { %2903 = vmatpush3.bf16.msra.mxu0 %v3103_v6  ;;  %2927 = vmatpush3.bf16.msra.mxu1 %v3104_v29 }
 0x2d0   : > { %2960 = vmatprep.subr.bf16.mxu1 %v3105_v8  ;;  %2936 = vmatprep.subr.bf16.mxu0 %v3113_v33 }
 0x2d2   : > { %2905 = vmatmul.mubr.bf16.vlgmr.msra.gmra.mxu0 %v3774_v2  ;;  %2929 = vmatmul.mubr.bf16.vlgmr.msra.gmra.mxu1 %v3774_v2 }
 0x2d3   : > { %2908 = vmatprep.mubr.bf16.mxu0 %v1315_v17  ;;  %2932 = vmatprep.mubr.bf16.mxu1 %v1315_v17 }
 0x2d4   : > { %2961 = vmatpush3.bf16.msra.mxu1 %v3105_v8  ;;  %2937 = vmatpush3.bf16.msra.mxu0 %v3113_v33 }
 0x2d5   : > { %2962 = vmatprep.subr.bf16.mxu1 %v3106_v30  ;;  %2938 = vmatprep.subr.bf16.mxu0 %v3114_v34 }
 0x2d8   : > { %2963 = vmatpush3.bf16.msra.mxu1 %v3106_v30  ;;  %2939 = vmatpush3.bf16.msra.mxu0 %v3114_v34 }
 0x2d9   : > { %2964 = vmatprep.subr.bf16.mxu1 %v3107_v1  ;;  %2940 = vmatprep.subr.bf16.mxu0 %v3115_v4 }
 0x2da   : > { %2909 = vmatmul.mubr.bf16.gmra.mxu0 %v1316_v23  ;;  %2933 = vmatmul.mubr.bf16.gmra.mxu1 %v1316_v23 }
 0x2dc   : > { %2965 = vmatpush3.bf16.msra.mxu1 %v3107_v1  ;;  %2941 = vmatpush3.bf16.msra.mxu0 %v3115_v4 }
 0x2dd   : > { %2966 = vmatprep.subr.bf16.mxu1 %v3108_v58  ;;  %2942 = vmatprep.subr.bf16.mxu0 %v3116_v35 }
 0x2e0   : > { %2967 = vmatpush3.bf16.msra.mxu1 %v3108_v58  ;;  %2943 = vmatpush3.bf16.msra.mxu0 %v3116_v35 }
 0x2e1   : > { %2968 = vmatprep.subr.bf16.mxu1 %v3109_v12  ;;  %2944 = vmatprep.subr.bf16.mxu0 %v3117_v36 }
 0x2e4   : > { %2969 = vmatpush3.bf16.msra.mxu1 %v3109_v12  ;;  %2945 = vmatpush3.bf16.msra.mxu0 %v3117_v36 }
 0x2e5   : > { %2970 = vmatprep.subr.bf16.mxu1 %v3110_v22  ;;  %2946 = vmatprep.subr.bf16.mxu0 %v3118_v11 }
 0x2e8   : > { %2971 = vmatpush3.bf16.msra.mxu1 %v3110_v22  ;;  %2947 = vmatpush3.bf16.msra.mxu0 %v3118_v11 }
 0x2e9   : > { %2972 = vmatprep.subr.bf16.mxu1 %v3111_v31  ;;  %2948 = vmatprep.subr.bf16.mxu0 %v3119_v39 }
 0x2ec   : > { %2973 = vmatpush3.bf16.msra.mxu1 %v3111_v31  ;;  %2949 = vmatpush3.bf16.msra.mxu0 %v3119_v39 }
 0x2ed   : > { %2974 = vmatprep.subr.bf16.mxu1 %v3112_v32  ;;  %2950 = vmatprep.subr.bf16.mxu0 %v3120_v40 }
 0x2f0   : > { %2975 = vmatpush3.bf16.msra.mxu1 %v3112_v32  ;;  %2951 = vmatpush3.bf16.msra.mxu0 %v3120_v40 }
 0x372   : > { %v3874_v44 = vpop.f32.mrf.mxu0  ;;  %v2882_v50 = vpop.f32.mrf.mxu1 }
 0x373   : > { %v2452_v45 = vmul.f32 -1.442695, %v3874_v44 }
 0x374   : > { %v1415_v43 = vpop.f32.mrf.mxu0  ;;  %v1544_v21 = vpop.f32.mrf.mxu1 }
 0x375   : > { %3201 = vpow2.f32 %v2452_v45  ;;  %v2450_v48 = vmul.f32 -1.442695, %v1415_v43 }
 0x376   : > { %v2859_v16 = vpop.f32.mrf.mxu0  ;;  %v2883_v14 = vpop.f32.mrf.mxu1 }
 0x377   : > { %3203 = vpow2.f32 %v2450_v48  ;;  %v2453_v49 = vmul.f32 -1.442695, %v2859_v16 }
 0x378   : > { %v1418_v51 = vpop.f32.mrf.mxu0  ;;  %v1547_v53 = vpop.f32.mrf.mxu1 }
 0x379   : > { %3205 = vpow2.f32 %v2453_v49  ;;  %v2451_v9 = vmul.f32 -1.442695, %v1418_v51 }
 0x37b   : > { %3207 = vpow2.f32 %v2451_v9 }
 0x37d   : > { %v3877_v52 = vpop.f32.mrf.mxu0  ;;  %v2886_v30 = vpop.f32.mrf.mxu1 }
 0x37e   : > { %v2456_v54 = vmul.f32 -1.442695, %v3877_v52 }
 0x37f   : > { %v3880_v55 = vpop.f32.mrf.mxu0  ;;  %v1560_v35 = vpop.f32.mrf.mxu1 }
 0x380   : > { %3209 = vpow2.f32 %v2456_v54  ;;  %v2454_v18 = vmul.f32 -1.442695, %v3880_v55 }
 0x381   : > { %v3883_v56 = vpop.f32.mrf.mxu0 }
 0x382   : > { %v3202_v59 = vpop.eup %3201  ;;  %3211 = vpow2.f32 %v2454_v18  ;;  %v2457_v61 = vmul.f32 -1.442695, %v3883_v56 }
 0x383   : > { %v3886_v63 = vpop.f32.mrf.mxu0  ;;  %v1601_v60 = vadd.f32 1.0, %v3202_v59 }
 0x384   : > { %v3204_v0 = vpop.eup %3203  ;;  %3213 = vpow2.f32 %v2457_v61  ;;  %v2455_v20 = vmul.f32 -1.442695, %v3886_v63 }
 0x385   : > { %v1599_v5 = vadd.f32 1.0, %v3204_v0 }
 0x386   : > { %v3206_v2 = vpop.eup %3205  ;;  %3215 = vpow2.f32 %v2455_v20 }
 0x387   : > { %3217 = vrcp.f32 %v1599_v5  ;;  %v1602_v41 = vadd.f32 1.0, %v3206_v2 }
 0x388   : > { %v3208_v37 = vpop.eup %3207  ;;  %3219 = vrcp.f32 %v1601_v60 }
 0x389   : > { %3221 = vrcp.f32 %v1602_v41  ;;  %v1600_v46 = vadd.f32 1.0, %v3208_v37 }
 0x38b   : > { %3223 = vrcp.f32 %v1600_v46 }
 0x38d   : > { %v3210_v7 = vpop.eup %3209 }
 0x38e   : > { %v1605_v57 = vadd.f32 1.0, %v3210_v7 }
 0x38f   : > { %v3212_v27 = vpop.eup %3211 }
 0x390   : > { %v1603_v10 = vadd.f32 1.0, %v3212_v27 }
 0x391   : > { %v3214_v13 = vpop.eup %3213 }
 0x392   : > { %3225 = vrcp.f32 %v1603_v10  ;;  %v1606_v15 = vadd.f32 1.0, %v3214_v13  ;;  %v3889_v17 = vpop.f32.mrf.mxu0 }
 0x393   : > { %v3216_v3 = vpop.eup %3215  ;;  %3227 = vrcp.f32 %v1605_v57  ;;  %v2508_v19 = vmul.f32 -1.442695, %v3889_v17 }
 0x394   : > { %v3218_v42 = vpop.eup %3217  ;;  %3229 = vrcp.f32 %v1606_v15  ;;  %v1604_v47 = vadd.f32 1.0, %v3216_v3  ;;  %v3892_v62 = vpop.f32.mrf.mxu0 }
 0x395   : > { %v3220_v23 = vpop.eup %3219  ;;  %3231 = vpow2.f32 %v2508_v19  ;;  %v2506_v26 = vmul.f32 -1.442695, %v3892_v62  ;;  %v1623_v25 = vmul.f32 %v3218_v42, %v1415_v43 }
 0x396   : > { %v3222_v38 = vpop.eup %3221  ;;  %3233 = vrcp.f32 %v1604_v47  ;;  %v3895_v24 = vpop.f32.mrf.mxu0  ;;  %v1625_v8 = vmul.f32 %v3220_v23, %v3874_v44 }
 0x397   : > { %v1626_v28 = vmul.f32 %v3222_v38, %v2859_v16  ;;  %3235 = vpow2.f32 %v2506_v26  ;;  %v2509_v6 = vmul.f32 -1.442695, %v3895_v24  ;;  %v1631_v32 = vmul.f32 %v1623_v25, %v1544_v21  ;;  %v2887_v16 = vpop.f32.mrf.mxu1 }
 0x398   : > { %v3224_v29 = vpop.eup %3223  ;;  %v3899_v1 = vpop.f32.mrf.mxu0  ;;  %v1633_v4 = vmul.f32 %v2882_v50, %v1625_v8 }
 0x399   : > { %v1624_v58 = vmul.f32 %v3224_v29, %v1418_v51  ;;  %3237 = vpow2.f32 %v2509_v6  ;;  %v2507_v12 = vmul.f32 -1.442695, %v3899_v1  ;;  %v1634_v22 = vmul.f32 %v2883_v14, %v1626_v28  ;;  %v1563_v5 = vpop.f32.mrf.mxu1 }
 0x39a   : > { %v3902_v31 = vpop.f32.mrf.mxu0 }
 0x39b   : > { %v1632_v33 = vmul.f32 %v1624_v58, %v1547_v53  ;;  %3239 = vpow2.f32 %v2507_v12  ;;  %v2512_v34 = vmul.f32 -1.442695, %v3902_v31  ;;  %v1640_v40 = vpack.c.bf16 %v1634_v22, %v1633_v4  ;;  %v2930_v21 = vpop.f32.mrf.mxu1 }
 0x39c   : > { %v3905_v36 = vpop.f32.mrf.mxu0 }
 0x39d   : > { %v1639_v11 = vpack.c.bf16 %v1632_v33, %v1631_v32  ;;  %3241 = vpow2.f32 %v2512_v34  ;;  %v2510_v39 = vmul.f32 -1.442695, %v3905_v36  ;;  %v1888_v14 = vpop.f32.mrf.mxu1 }
 0x39e   : > { %v3908_v44 = vpop.f32.mrf.mxu0 }
 0x39f   : > { %v3226_v45 = vpop.eup %3225  ;;  %3243 = vpow2.f32 %v2510_v39  ;;  %v2513_v43 = vmul.f32 -1.442695, %v3908_v44  ;;  %2976 = vmatprep.mubr.bf16.mxu1 %v1639_v11  ;;  %v2931_v42 = vpop.f32.mrf.mxu1 }
 0x3a0   : > { %v3228_v48 = vpop.eup %3227  ;;  %v3911_v49 = vpop.f32.mrf.mxu0  ;;  %2977 = vmatmul.mubr.bf16.vlgmr.msra.gmra.mxu1 %v1640_v40  ;;  %v1627_v18 = vmul.f32 %v3226_v45, %v3880_v55 }
 0x3a1   : > { %v3230_v51 = vpop.eup %3229  ;;  %3245 = vpow2.f32 %v2513_v43  ;;  %v2511_v9 = vmul.f32 -1.442695, %v3911_v49  ;;  %v1629_v0 = vmul.f32 %v3228_v48, %v3877_v52  ;;  %v1891_v38 = vpop.f32.mrf.mxu1 }
 0x3a2   : > { %v3232_v54 = vpop.eup %3231  ;;  %v1630_v59 = vmul.f32 %v3230_v51, %v3883_v56  ;;  %v1635_v50 = vmul.f32 %v1627_v18, %v1560_v35 }
 0x3a3   : > { %v3234_v61 = vpop.eup %3233  ;;  %3247 = vpow2.f32 %v2511_v9  ;;  %v1945_v2 = vadd.f32 1.0, %v3232_v54  ;;  %v1637_v27 = vmul.f32 %v2886_v30, %v1629_v0  ;;  %v2934_v6 = vpop.f32.mrf.mxu1 }
 0x3a4   : > { %v3236_v60 = vpop.eup %3235  ;;  %v1628_v20 = vmul.f32 %v3234_v61, %v3886_v63  ;;  %v1638_v41 = vmul.f32 %v2887_v16, %v1630_v59 }
 0x3a5   : > { %v1943_v37 = vadd.f32 1.0, %v3236_v60  ;;  %v1904_v32 = vpop.f32.mrf.mxu1 }
 0x3a6   : > { %v3238_v46 = vpop.eup %3237  ;;  %v1636_v7 = vmul.f32 %v1628_v20, %v1563_v5  ;;  %v1642_v10 = vpack.c.bf16 %v1638_v41, %v1637_v27 }
 0x3a7   : > { %3249 = vrcp.f32 %v1943_v37  ;;  %v1946_v55 = vadd.f32 1.0, %v3238_v46  ;;  %v2935_v43 = vpop.f32.mrf.mxu1 }
 0x3a8   : > { %v3240_v57 = vpop.eup %3239  ;;  %v1641_v56 = vpack.c.bf16 %v1636_v7, %v1635_v50  ;;  %3251 = vrcp.f32 %v1945_v2 }
 0x3a9   : > { %3253 = vrcp.f32 %v1946_v55  ;;  %v1944_v52 = vadd.f32 1.0, %v3240_v57  ;;  %v1907_v51 = vpop.f32.mrf.mxu1 }
 0x3aa   : > { %v3242_v13 = vpop.eup %3241  ;;  %2980 = vmatprep.mubr.bf16.mxu1 %v1641_v56 }
 0x3ab   : > { %3255 = vrcp.f32 %v1944_v52  ;;  %2981 = vmatmul.mubr.bf16.gmra.mxu1 %v1642_v10  ;;  %v1949_v15 = vadd.f32 1.0, %v3242_v13 }
 0x3ac   : > { %v3244_v63 = vpop.eup %3243 }
 0x3ad   : > { %v1947_v3 = vadd.f32 1.0, %v3244_v63 }
 0x3ae   : > { %v3246_v19 = vpop.eup %3245 }
 0x3af   : > { %3257 = vrcp.f32 %v1947_v3  ;;  %v1950_v47 = vadd.f32 1.0, %v3246_v19 }
 0x3b0   : > { %v3248_v23 = vpop.eup %3247  ;;  %3259 = vrcp.f32 %v1949_v15 }
 0x3b1   : > { %3261 = vrcp.f32 %v1950_v47  ;;  %v1948_v26 = vadd.f32 1.0, %v3248_v23 }
 0x3b3   : > { %3263 = vrcp.f32 %v1948_v26 }
 0x3b4   : > { %v3250_v53 = vpop.eup %3249 }
 0x3b5   : > { %v3252_v25 = vpop.eup %3251  ;;  %v1967_v29 = vmul.f32 %v3250_v53, %v3892_v62 }
 0x3b6   : > { %v3254_v28 = vpop.eup %3253  ;;  %v1969_v58 = vmul.f32 %v3252_v25, %v3889_v17 }
 0x3b7   : > { %v1970_v8 = vmul.f32 %v3254_v28, %v3895_v24  ;;  %v1975_v33 = vmul.f32 %v1967_v29, %v1888_v14 }
 0x3b8   : > { %v3256_v30 = vpop.eup %3255  ;;  %v1977_v35 = vmul.f32 %v2930_v21, %v1969_v58 }
 0x3b9   : > { %v1968_v12 = vmul.f32 %v3256_v30, %v3899_v1  ;;  %v1978_v22 = vmul.f32 %v2931_v42, %v1970_v8 }
 0x3bb   : > { %v1976_v34 = vmul.f32 %v1968_v12, %v1891_v38  ;;  %v1984_v45 = vpack.c.bf16 %v1978_v22, %v1977_v35 }
 0x3bc   : > { %v3258_v4 = vpop.eup %3257 }
 0x3bd   : > { %v3260_v11 = vpop.eup %3259  ;;  %v1983_v39 = vpack.c.bf16 %v1976_v34, %v1975_v33  ;;  %v1971_v62 = vmul.f32 %v3258_v4, %v3905_v36 }
 0x3be   : > { %v3262_v40 = vpop.eup %3261  ;;  %v1973_v1 = vmul.f32 %v3260_v11, %v3902_v31 }
 0x3bf   : > { %v1974_v24 = vmul.f32 %v3262_v40, %v3908_v44  ;;  %2952 = vmatprep.mubr.bf16.mxu0 %v1983_v39  ;;  %v1979_v9 = vmul.f32 %v1971_v62, %v1904_v32 }
 0x3c0   : > { %v3264_v17 = vpop.eup %3263  ;;  %2953 = vmatmul.mubr.bf16.vlgmr.msra.gmra.mxu0 %v1984_v45  ;;  %v1981_v18 = vmul.f32 %v2934_v6, %v1973_v1 }
 0x3c1   : > { %v1972_v48 = vmul.f32 %v3264_v17, %v3911_v49  ;;  %v1982_v16 = vmul.f32 %v2935_v43, %v1974_v24 }
 0x3c3   : > { %v1980_v54 = vmul.f32 %v1972_v48, %v1907_v51  ;;  %v1986_v61 = vpack.c.bf16 %v1982_v16, %v1981_v18 }
 0x3c5   : > { %v1985_v59 = vpack.c.bf16 %v1980_v54, %v1979_v9 }
 0x3c7   : > { %2956 = vmatprep.mubr.bf16.mxu0 %v1985_v59 }
 0x3c8   : > { %2957 = vmatmul.mubr.bf16.gmra.mxu0 %v1986_v61 }
 0x460   : > { %v2978_v36 = vpop.f32.mrf.mxu1 }
 0x462   : > { %v2199_v44 = vpop.f32.mrf.mxu1 }
 0x464   : > { %v2979_v0 = vpop.f32.mrf.mxu1 }
 0x466   : > { %v2202_v31 = vpop.f32.mrf.mxu1 }
 0x46b   : > { %v2982_v5 = vpop.f32.mrf.mxu1 }
 0x46d   : > { %v2215_v46 = vpop.f32.mrf.mxu1 }
 0x46f   : > { %v2983_v55 = vpop.f32.mrf.mxu1 }
 0x471   : > { %v2218_v13 = vpop.f32.mrf.mxu1 }
 0x480   : > { %v2954_v60 = vpop.f32.mrf.mxu0 }
 0x481   : > { %v2208_v20 = vadd.f32 %v2978_v36, %v2954_v60 }
 0x482   : > { %v2086_v49 = vpop.f32.mrf.mxu0 }
 0x483   : > { %2232 = vst [vmem:[%s299_s13 + $0x10] sm:$0xff] %v2208_v20  ;;  %v2200_v2 = vadd.f32 %v2199_v44, %v2086_v49 }
 0x484   : > { %v2955_v41 = vpop.f32.mrf.mxu0 }
 0x485   : > { %2230 = vst [vmem:[%s299_s13] sm:$0xff] %v2200_v2  ;;  %v2211_v37 = vadd.f32 %v2979_v0, %v2955_v41 }
 0x486   : > { %v2089_v50 = vpop.f32.mrf.mxu0 }
 0x487   : > { %2233 = vst [vmem:[%s299_s13 + $0x18] sm:$0xff] %v2211_v37  ;;  %v2203_v7 = vadd.f32 %v2202_v31, %v2089_v50 }
 0x488   : > { %v2958_v21 = vpop.f32.mrf.mxu0 }
 0x489   : > { %2231 = vst [vmem:[%s299_s13 + $0x8] sm:$0xff] %v2203_v7  ;;  %v2224_v27 = vadd.f32 %v2982_v5, %v2958_v21 }
 0x48a   : > { %v2102_v57 = vpop.f32.mrf.mxu0 }
 0x48b   : > { %2236 = vst [vmem:[%s299_s13 + $0x30] sm:$0xff] %v2224_v27  ;;  %v2216_v56 = vadd.f32 %v2215_v46, %v2102_v57 }
 0x48c   : > { %v2959_v10 = vpop.f32.mrf.mxu0 }
 0x48d   : > { %2234 = vst [vmem:[%s299_s13 + $0x20] sm:$0xff] %v2216_v56  ;;  %v2227_v52 = vadd.f32 %v2983_v55, %v2959_v10 }
 0x48e   : > { %v2105_v14 = vpop.f32.mrf.mxu0 }
 0x48f   : > { %2237 = vst [vmem:[%s299_s13 + $0x38] sm:$0xff] %v2227_v52  ;;  %v2219_v63 = vadd.f32 %v2218_v13, %v2105_v14 }
 0x491   : > { %2235 = vst [vmem:[%s299_s13 + $0x28] sm:$0xff] %v2219_v63 }
 0x492   : > { %3279 = shalt.err (!%p3276_p3)
}
 0x493   : > { %s3280_s26 = scalar_lea.hbm %s3933_s21, 1024  ;;  %s3284_s13 = scalar_lea.hbm %s3987_s8, 2048 }
 0x494   : > { %p3281_p4 = scmp.ne.s32.totalorder %s3933_s21, %s3280_s26  ;;  %p3285_p9 = scmp.lt.s32.totalorder %s3933_s21, %s3987_s8 }
 0x495   : > { %p3286_p10 = scmp.lt.s32.totalorder %s3284_s13, %s3280_s26 }
 0x496   : > { %p3282_p7 = pnand %p3281_p4, %p3414_p5 }
 0x497   : > { %p3287_p11 = por %p3286_p10, %p3285_p9 }
 0x498   : > { %p3283_p8 = pneg %p3282_p7 }
 0x49a   : > { %p3288_p12 = pnand %p3287_p11, %p3283_p8 }
 0x49c   : > { %3291 = shalt.err (!%p3288_p12)
}
 0x49d   : > { %s3329_s20 = smov 128   ;;  %s3330_s22 = smov 8  }
 0x49e   : > { %2984 = dma.vmem_to_hbm [thread:$0]  (%p3414_p5), %s3935_s18, 1024, %s3933_s21, %s3939_s9, %s3329_s20, %s3329_s20, %s3330_s22  }
 0x49f PF: > { %p2990_p13 = scmp.ge.s32.totalorder %s3326_s30, 2  ;;  %s2267_s23 = sand.u32 1, %s3314_s27  }
 0x4a0   : > { %s2268_s24 = scalar_lea.sflag [#allocation3], %s2267_s23 }
 0x4a1   : > { %p2987_p0 = pnand %p2990_p13, %p3418_p6 }
 0x4a3   : > { %p2988_p1 = pneg %p2987_p0 }
 0x4a5   : > { %3309 = dma.done.wait (%p2988_p1), %s2268_s24, 1024  }
 0x4a6   : > { %3311 = vsyncadd (%p2988_p1), %s2268_s24, 4294966272  ;;  %p18_p2 = scmp.ge.s32.totalorder %s3401_s11, 4   ;;  %s3990_s27 = smov %s3318_s28 }
 0x4a7   : > { %s3991_s28 = smov %s3322_s29  ;;  %s3992_s29 = smov %s3412_s14 }
 0x4a8   : > { %s3993_s30 = smov %s3401_s11  ;;  %20 = sbr.rel (!%p18_p2) target bundleno = 3 (0x3), region = 93 }
 0x4ad   :  { %2273 = vsyncpa [#allocation3], 1 }
 0x4ae   :  { %2275 = vsyncpa [#allocation3 + $0x1], 1 }

</bundles_post_ra>
